<compile_context>
chip_gen: v7x
topology: tpu7x:2x2x1
jax: 0.10.0
libtpu: 0.0.40
codegen_flags: <defaults>
</compile_context>

<pallas_src>
import jax
import jax.numpy as jnp
from jax.experimental import pallas as pl
from jax.experimental.pallas import tpu as pltpu

BN_EPS = 1e-5


# ------------------------------ fused kernel ------------------------------
def _bn_relu(acc, gamma, beta, inv_m):
    # acc: (M, Cout) f32 conv accumulator (bias-free: the conv bias cancels under
    # training-mode BatchNorm since it shifts the mean by exactly the bias).
    mean = jnp.sum(acc, axis=0, keepdims=True) * inv_m                # (1, Cout)
    centered = acc - mean
    var = jnp.sum(centered * centered, axis=0, keepdims=True) * inv_m  # biased variance
    scale = gamma * jax.lax.rsqrt(var + BN_EPS)                       # (1, Cout)
    return jnp.maximum(centered * scale + beta, 0.0)                  # (M, Cout)


def _down_kernel(xr_ref, w1_ref, w2_ref, g1_ref, be1_ref, g2_ref, be2_ref,
                 o_ref, pp_ref, c1p_ref):
    # xr_ref  : (N, Ho, 2, Wo, 2*Cin) f32  input with 2x2 pooling parities split (free reshape)
    # w1_ref  : (3, 3, Cin,  Cout)    bf16 conv1 weights (tap-major)
    # w2_ref  : (3, 3, Cout, Cout)    bf16 conv2 weights
    # g*/be*  : (1, Cout)             f32  BN gamma / beta
    # o_ref   : (M, Cout)                  output slab, M = N*Ho*Wo
    # pp_ref  : (N, Ho+2, Wo+2, Cin)  f32  zero-padded pooled input   (VMEM scratch)
    # c1p_ref : (N, Ho+2, Wo+2, Cout) f32  zero-padded conv1 output   (VMEM scratch)
    N, Ho, _, Wo, C2 = xr_ref.shape
    Cin = C2 // 2
    M, Cout = o_ref.shape
    inv_m = 1.0 / float(M)

    # ---------------- 2x2 max-pool (single read of x, no HBM copies) ----------------
    rows = jnp.maximum(xr_ref[:, :, 0, :, :], xr_ref[:, :, 1, :, :])   # (N,Ho,Wo,2Cin)
    pooled = jnp.maximum(rows[..., :Cin], rows[..., Cin:])             # (N,Ho,Wo,Cin)

    # ---------------- conv1 + BN + ReLU ----------------
    pp_ref[...] = jnp.zeros_like(pp_ref)                # in-kernel zero padding
    pp_ref[:, 1:Ho + 1, 1:Wo + 1, :] = pooled
    acc = jnp.zeros((M, Cout), jnp.float32)
    for dy in range(3):                                  # 9 taps, each a (M,Cin)x(Cin,Cout)
        for dx in range(3):                              # MXU matmul with M = N*Ho*Wo
            tap = pp_ref[:, dy:dy + Ho, dx:dx + Wo, :].reshape(M, Cin)
            acc = acc + jnp.dot(tap.astype(jnp.bfloat16), w1_ref[dy, dx],
                                preferred_element_type=jnp.float32)
    y1 = _bn_relu(acc, g1_ref[...], be1_ref[...], inv_m)               # (M, Cout) f32

    # ---------------- conv2 + BN + ReLU ----------------
    c1p_ref[...] = jnp.zeros_like(c1p_ref)
    c1p_ref[:, 1:Ho + 1, 1:Wo + 1, :] = y1.reshape(N, Ho, Wo, Cout)
    acc2 = jnp.zeros((M, Cout), jnp.float32)
    for dy in range(3):
        for dx in range(3):
            tap = c1p_ref[:, dy:dy + Ho, dx:dx + Wo, :].reshape(M, Cout)
            acc2 = acc2 + jnp.dot(tap.astype(jnp.bfloat16), w2_ref[dy, dx],
                                  preferred_element_type=jnp.float32)
    y2 = _bn_relu(acc2, g2_ref[...], be2_ref[...], inv_m)              # (M, Cout) f32

    # single slab store of the whole result
    o_ref[...] = y2.astype(o_ref.dtype)


# ------------------------------ wrapper ------------------------------
def down_forward(x_nchw, p):
    N, Cin, H, W = x_nchw.shape
    Cout = p["w1"].shape[0]
    assert H % 2 == 0 and W % 2 == 0, "MaxPool2d(2) path assumes even spatial dims"
    Ho, Wo = H // 2, W // 2
    M = N * Ho * Wo

    # Layout glue only (no pad, no strided copies): NCHW -> NHWC transpose plus a free
    # row-major-preserving reshape exposing the 2x2 pooling parities as explicit dims.
    xr = jnp.transpose(x_nchw, (0, 2, 3, 1)).reshape(N, Ho, 2, Wo, 2 * Cin)
    w1 = jnp.transpose(p["w1"], (2, 3, 1, 0)).astype(jnp.bfloat16)     # (3,3,Cin,Cout)
    w2 = jnp.transpose(p["w2"], (2, 3, 1, 0)).astype(jnp.bfloat16)     # (3,3,Cout,Cout)
    g1 = p["g1"].reshape(1, Cout).astype(jnp.float32)
    be1 = p["be1"].reshape(1, Cout).astype(jnp.float32)
    g2 = p["g2"].reshape(1, Cout).astype(jnp.float32)
    be2 = p["be2"].reshape(1, Cout).astype(jnp.float32)
    # p["b1"] / p["b2"] (conv biases) cancel exactly under training-mode BatchNorm and are
    # therefore not passed to the kernel.

    out2d = pl.pallas_call(
        _down_kernel,
        grid=(1,),
        in_specs=[
            pl.BlockSpec(xr.shape, lambda i: (0, 0, 0, 0, 0)),
            pl.BlockSpec(w1.shape, lambda i: (0, 0, 0, 0)),
            pl.BlockSpec(w2.shape, lambda i: (0, 0, 0, 0)),
            pl.BlockSpec((1, Cout), lambda i: (0, 0)),
            pl.BlockSpec((1, Cout), lambda i: (0, 0)),
            pl.BlockSpec((1, Cout), lambda i: (0, 0)),
            pl.BlockSpec((1, Cout), lambda i: (0, 0)),
        ],
        out_specs=pl.BlockSpec((M, Cout), lambda i: (0, 0)),
        out_shape=jax.ShapeDtypeStruct((M, Cout), x_nchw.dtype),
        scratch_shapes=[
            pltpu.VMEM((N, Ho + 2, Wo + 2, Cin), jnp.float32),
            pltpu.VMEM((N, Ho + 2, Wo + 2, Cout), jnp.float32),
        ],
        compiler_params=pltpu.CompilerParams(
            dimension_semantics=("arbitrary",),
            vmem_limit_bytes=8 * 1024 * 1024,   # explicit (generous) VMEM budget
        ),
    )(xr, w1, w2, g1, be1, g2, be2)

    # (N*Ho*Wo, Cout) -> NCHW: tiny (4 KiB) layout-only transpose done by XLA.
    return out2d.reshape(N, Ho, Wo, Cout).transpose(0, 3, 1, 2)


# ------------------------------ params / reference ------------------------------
def init_down_params(key, in_ch, out_ch):
    k1, k2 = jax.random.split(key)

    def conv_init(k, cin, cout):
        kw, kb = jax.random.split(k)
        bound = 1.0 / (cin * 9) ** 0.5
        w = jax.random.uniform(kw, (cout, cin, 3, 3), jnp.float32, -bound, bound)
        b = jax.random.uniform(kb, (cout,), jnp.float32, -bound, bound)
        return w, b

    w1, b1 = conv_init(k1, in_ch, out_ch)
    w2, b2 = conv_init(k2, out_ch, out_ch)
    ones = jnp.ones((out_ch,), jnp.float32)
    zeros = jnp.zeros((out_ch,), jnp.float32)
    # nn.BatchNorm2d default init: weight (gamma) = 1, bias (beta) = 0
    return dict(w1=w1, b1=b1, g1=ones, be1=zeros,
                w2=w2, b2=b2, g2=ones, be2=zeros)


def down_reference(x_nchw, p):
    def conv_bn_relu(x, w, b, g, be):
        y = jax.lax.conv_general_dilated(
            x, w, window_strides=(1, 1), padding=((1, 1), (1, 1)),
            dimension_numbers=("NCHW", "OIHW", "NCHW"))
        y = y + b[None, :, None, None]
        mean = jnp.mean(y, axis=(0, 2, 3), keepdims=True)
        var = jnp.mean((y - mean) ** 2, axis=(0, 2, 3), keepdims=True)
        y = (y - mean) * jax.lax.rsqrt(var + BN_EPS)
        y = y * g[None, :, None, None] + be[None, :, None, None]
        return jnp.maximum(y, 0.0)

    x = jax.lax.reduce_window(x_nchw, -jnp.inf, jax.lax.max,
                              window_dimensions=(1, 1, 2, 2),
                              window_strides=(1, 1, 2, 2), padding="VALID")
    x = conv_bn_relu(x, p["w1"], p["b1"], p["g1"], p["be1"])
    x = conv_bn_relu(x, p["w2"], p["b2"], p["g2"], p["be2"])
    return x


if __name__ == "__main__":
    key = jax.random.PRNGKey(0)
    kx, kp = jax.random.split(key)
    in_ch, out_ch = 4, 8
    x = jax.random.normal(kx, (2, in_ch, 16, 16), jnp.float32)
    params = init_down_params(kp, in_ch, out_ch)

    out = jax.block_until_ready(jax.jit(down_forward)(x, params))
    ref = down_reference(x, params)

    assert out.shape == (2, out_ch, 8, 8), out.shape
    # Kernel uses bf16 MXU operands (f32 accumulation); reference is pure f32, so allow a
    # few-percent absolute slack on the O(1)-scale post-BN activations.
    assert jnp.allclose(out, ref, rtol=5e-2, atol=5e-2), float(jnp.max(jnp.abs(out - ref)))
    print("KERNEL_OK")
</pallas_src>

<mosaic_0001>
module attributes {stable_mosaic.version = 11 : i64} {
  func.func @_down_kernel(%arg0: i32, %arg1: memref<2x8x2x8x8xf32, #tpu.memory_space<vmem>>, %arg2: memref<3x3x4x8xbf16, #tpu.memory_space<vmem>>, %arg3: memref<3x3x8x8xbf16, #tpu.memory_space<vmem>>, %arg4: memref<1x8xf32, #tpu.memory_space<vmem>>, %arg5: memref<1x8xf32, #tpu.memory_space<vmem>>, %arg6: memref<1x8xf32, #tpu.memory_space<vmem>>, %arg7: memref<1x8xf32, #tpu.memory_space<vmem>>, %arg8: memref<128x8xf32, #tpu.memory_space<vmem>>, %arg9: memref<2x10x10x4xf32, #tpu.memory_space<vmem>>, %arg10: memref<2x10x10x8xf32, #tpu.memory_space<vmem>>) attributes {dimension_semantics = [#tpu.dimension_semantics<arbitrary>], iteration_bounds = array<i64: 1>, scalar_prefetch = 0 : i64, scratch_operands = 2 : i64, tpu.core_type = #tpu.core_type<tc>, window_params = [{pipeline_mode = #tpu.pipeline_mode<synchronous>, transform_indices = @transform_0, window_bounds = array<i64: 2, 8, 2, 8, 8>}, {pipeline_mode = #tpu.pipeline_mode<synchronous>, transform_indices = @transform_1, window_bounds = array<i64: 3, 3, 4, 8>}, {pipeline_mode = #tpu.pipeline_mode<synchronous>, transform_indices = @transform_2, window_bounds = array<i64: 3, 3, 8, 8>}, {pipeline_mode = #tpu.pipeline_mode<synchronous>, transform_indices = @transform_3, window_bounds = array<i64: 1, 8>}, {pipeline_mode = #tpu.pipeline_mode<synchronous>, transform_indices = @transform_4, window_bounds = array<i64: 1, 8>}, {pipeline_mode = #tpu.pipeline_mode<synchronous>, transform_indices = @transform_5, window_bounds = array<i64: 1, 8>}, {pipeline_mode = #tpu.pipeline_mode<synchronous>, transform_indices = @transform_6, window_bounds = array<i64: 1, 8>}, {pipeline_mode = #tpu.pipeline_mode<synchronous>, transform_indices = @transform_7, window_bounds = array<i64: 128, 8>}]} {
    %c0 = arith.constant 0 : index
    %c0_0 = arith.constant 0 : index
    %c0_1 = arith.constant 0 : index
    %c0_2 = arith.constant 0 : index
    %c0_3 = arith.constant 0 : index
    %0 = vector.load %arg1[%c0, %c0_0, %c0_1, %c0_2, %c0_3] : memref<2x8x2x8x8xf32, #tpu.memory_space<vmem>>, vector<2x8x1x8x8xf32>
    %1 = vector.shape_cast %0 : vector<2x8x1x8x8xf32> to vector<2x8x8x8xf32>
    %c0_4 = arith.constant 0 : index
    %c0_5 = arith.constant 0 : index
    %c1 = arith.constant 1 : index
    %c0_6 = arith.constant 0 : index
    %c0_7 = arith.constant 0 : index
    %2 = vector.load %arg1[%c0_4, %c0_5, %c1, %c0_6, %c0_7] : memref<2x8x2x8x8xf32, #tpu.memory_space<vmem>>, vector<2x8x1x8x8xf32>
    %3 = vector.shape_cast %2 : vector<2x8x1x8x8xf32> to vector<2x8x8x8xf32>
    %4 = arith.maximumf %1, %3 : vector<2x8x8x8xf32>
    %5 = vector.extract_strided_slice %4 {offsets = [0, 0, 0, 0], sizes = [2, 8, 8, 4], strides = [1, 1, 1, 1]} : vector<2x8x8x8xf32> to vector<2x8x8x4xf32>
    %6 = vector.extract_strided_slice %4 {offsets = [0, 0, 0, 4], sizes = [2, 8, 8, 4], strides = [1, 1, 1, 1]} : vector<2x8x8x8xf32> to vector<2x8x8x4xf32>
    %7 = arith.maximumf %5, %6 : vector<2x8x8x4xf32>
    %cst = arith.constant 0.000000e+00 : f32
    %8 = vector.broadcast %cst : f32 to vector<2x10x10x4xf32>
    %c0_8 = arith.constant 0 : index
    %c0_9 = arith.constant 0 : index
    %c0_10 = arith.constant 0 : index
    %c0_11 = arith.constant 0 : index
    %9 = vector.load %arg9[%c0_8, %c0_9, %c0_10, %c0_11] : memref<2x10x10x4xf32, #tpu.memory_space<vmem>>, vector<2x10x10x4xf32>
    tpu.vector_store %arg9[%c0_8, %c0_9, %c0_10, %c0_11], %8 {strides = array<i32>} : memref<2x10x10x4xf32, #tpu.memory_space<vmem>>, vector<2x10x10x4xf32>,
    %c0_12 = arith.constant 0 : index
    %c1_13 = arith.constant 1 : index
    %c1_14 = arith.constant 1 : index
    %c0_15 = arith.constant 0 : index
    %10 = vector.load %arg9[%c0_12, %c1_13, %c1_14, %c0_15] : memref<2x10x10x4xf32, #tpu.memory_space<vmem>>, vector<2x8x8x4xf32>
    tpu.vector_store %arg9[%c0_12, %c1_13, %c1_14, %c0_15], %7 {strides = array<i32>} : memref<2x10x10x4xf32, #tpu.memory_space<vmem>>, vector<2x8x8x4xf32>,
    %cst_16 = arith.constant 0.000000e+00 : f32
    %11 = vector.broadcast %cst_16 : f32 to vector<128x8xf32>
    %c0_17 = arith.constant 0 : index
    %c0_18 = arith.constant 0 : index
    %c0_19 = arith.constant 0 : index
    %c0_20 = arith.constant 0 : index
    %12 = vector.load %arg9[%c0_17, %c0_18, %c0_19, %c0_20] : memref<2x10x10x4xf32, #tpu.memory_space<vmem>>, vector<2x8x8x4xf32>
    %13 = vector.shape_cast %12 : vector<2x8x8x4xf32> to vector<128x4xf32>
    %14 = arith.truncf %13 : vector<128x4xf32> to vector<128x4xbf16>
    %c0_21 = arith.constant 0 : index
    %c0_22 = arith.constant 0 : index
    %c0_23 = arith.constant 0 : index
    %c0_24 = arith.constant 0 : index
    %15 = vector.load %arg2[%c0_21, %c0_22, %c0_23, %c0_24] : memref<3x3x4x8xbf16, #tpu.memory_space<vmem>>, vector<1x1x4x8xbf16>
    %16 = vector.shape_cast %15 : vector<1x1x4x8xbf16> to vector<4x8xbf16>
    %cst_25 = arith.constant dense<0.000000e+00> : vector<128x8xf32>
    %17 = tpu.matmul %14, %16, %cst_25 {dimension_numbers = #tpu.dot_dimension_numbers<[1], [0], [0], [1], [0, 0, 1, 1], [], []>} : vector<128x4xbf16>, vector<4x8xbf16>, vector<128x8xf32> -> vector<128x8xf32>
    %18 = arith.addf %11, %17 : vector<128x8xf32>
    %c0_26 = arith.constant 0 : index
    %c0_27 = arith.constant 0 : index
    %c1_28 = arith.constant 1 : index
    %c0_29 = arith.constant 0 : index
    %19 = vector.load %arg9[%c0_26, %c0_27, %c1_28, %c0_29] : memref<2x10x10x4xf32, #tpu.memory_space<vmem>>, vector<2x8x8x4xf32>
    %20 = vector.shape_cast %19 : vector<2x8x8x4xf32> to vector<128x4xf32>
    %21 = arith.truncf %20 : vector<128x4xf32> to vector<128x4xbf16>
    %c0_30 = arith.constant 0 : index
    %c1_31 = arith.constant 1 : index
    %c0_32 = arith.constant 0 : index
    %c0_33 = arith.constant 0 : index
    %22 = vector.load %arg2[%c0_30, %c1_31, %c0_32, %c0_33] : memref<3x3x4x8xbf16, #tpu.memory_space<vmem>>, vector<1x1x4x8xbf16>
    %23 = vector.shape_cast %22 : vector<1x1x4x8xbf16> to vector<4x8xbf16>
    %cst_34 = arith.constant dense<0.000000e+00> : vector<128x8xf32>
    %24 = tpu.matmul %21, %23, %cst_34 {dimension_numbers = #tpu.dot_dimension_numbers<[1], [0], [0], [1], [0, 0, 1, 1], [], []>} : vector<128x4xbf16>, vector<4x8xbf16>, vector<128x8xf32> -> vector<128x8xf32>
    %25 = arith.addf %18, %24 : vector<128x8xf32>
    %c0_35 = arith.constant 0 : index
    %c0_36 = arith.constant 0 : index
    %c2 = arith.constant 2 : index
    %c0_37 = arith.constant 0 : index
    %26 = vector.load %arg9[%c0_35, %c0_36, %c2, %c0_37] : memref<2x10x10x4xf32, #tpu.memory_space<vmem>>, vector<2x8x8x4xf32>
    %27 = vector.shape_cast %26 : vector<2x8x8x4xf32> to vector<128x4xf32>
    %28 = arith.truncf %27 : vector<128x4xf32> to vector<128x4xbf16>
    %c0_38 = arith.constant 0 : index
    %c2_39 = arith.constant 2 : index
    %c0_40 = arith.constant 0 : index
    %c0_41 = arith.constant 0 : index
    %29 = vector.load %arg2[%c0_38, %c2_39, %c0_40, %c0_41] : memref<3x3x4x8xbf16, #tpu.memory_space<vmem>>, vector<1x1x4x8xbf16>
    %30 = vector.shape_cast %29 : vector<1x1x4x8xbf16> to vector<4x8xbf16>
    %cst_42 = arith.constant dense<0.000000e+00> : vector<128x8xf32>
    %31 = tpu.matmul %28, %30, %cst_42 {dimension_numbers = #tpu.dot_dimension_numbers<[1], [0], [0], [1], [0, 0, 1, 1], [], []>} : vector<128x4xbf16>, vector<4x8xbf16>, vector<128x8xf32> -> vector<128x8xf32>
    %32 = arith.addf %25, %31 : vector<128x8xf32>
    %c0_43 = arith.constant 0 : index
    %c1_44 = arith.constant 1 : index
    %c0_45 = arith.constant 0 : index
    %c0_46 = arith.constant 0 : index
    %33 = vector.load %arg9[%c0_43, %c1_44, %c0_45, %c0_46] : memref<2x10x10x4xf32, #tpu.memory_space<vmem>>, vector<2x8x8x4xf32>
    %34 = vector.shape_cast %33 : vector<2x8x8x4xf32> to vector<128x4xf32>
    %35 = arith.truncf %34 : vector<128x4xf32> to vector<128x4xbf16>
    %c1_47 = arith.constant 1 : index
    %c0_48 = arith.constant 0 : index
    %c0_49 = arith.constant 0 : index
    %c0_50 = arith.constant 0 : index
    %36 = vector.load %arg2[%c1_47, %c0_48, %c0_49, %c0_50] : memref<3x3x4x8xbf16, #tpu.memory_space<vmem>>, vector<1x1x4x8xbf16>
    %37 = vector.shape_cast %36 : vector<1x1x4x8xbf16> to vector<4x8xbf16>
    %cst_51 = arith.constant dense<0.000000e+00> : vector<128x8xf32>
    %38 = tpu.matmul %35, %37, %cst_51 {dimension_numbers = #tpu.dot_dimension_numbers<[1], [0], [0], [1], [0, 0, 1, 1], [], []>} : vector<128x4xbf16>, vector<4x8xbf16>, vector<128x8xf32> -> vector<128x8xf32>
    %39 = arith.addf %32, %38 : vector<128x8xf32>
    %c0_52 = arith.constant 0 : index
    %c1_53 = arith.constant 1 : index
    %c1_54 = arith.constant 1 : index
    %c0_55 = arith.constant 0 : index
    %40 = vector.load %arg9[%c0_52, %c1_53, %c1_54, %c0_55] : memref<2x10x10x4xf32, #tpu.memory_space<vmem>>, vector<2x8x8x4xf32>
    %41 = vector.shape_cast %40 : vector<2x8x8x4xf32> to vector<128x4xf32>
    %42 = arith.truncf %41 : vector<128x4xf32> to vector<128x4xbf16>
    %c1_56 = arith.constant 1 : index
    %c1_57 = arith.constant 1 : index
    %c0_58 = arith.constant 0 : index
    %c0_59 = arith.constant 0 : index
    %43 = vector.load %arg2[%c1_56, %c1_57, %c0_58, %c0_59] : memref<3x3x4x8xbf16, #tpu.memory_space<vmem>>, vector<1x1x4x8xbf16>
    %44 = vector.shape_cast %43 : vector<1x1x4x8xbf16> to vector<4x8xbf16>
    %cst_60 = arith.constant dense<0.000000e+00> : vector<128x8xf32>
    %45 = tpu.matmul %42, %44, %cst_60 {dimension_numbers = #tpu.dot_dimension_numbers<[1], [0], [0], [1], [0, 0, 1, 1], [], []>} : vector<128x4xbf16>, vector<4x8xbf16>, vector<128x8xf32> -> vector<128x8xf32>
    %46 = arith.addf %39, %45 : vector<128x8xf32>
    %c0_61 = arith.constant 0 : index
    %c1_62 = arith.constant 1 : index
    %c2_63 = arith.constant 2 : index
    %c0_64 = arith.constant 0 : index
    %47 = vector.load %arg9[%c0_61, %c1_62, %c2_63, %c0_64] : memref<2x10x10x4xf32, #tpu.memory_space<vmem>>, vector<2x8x8x4xf32>
    %48 = vector.shape_cast %47 : vector<2x8x8x4xf32> to vector<128x4xf32>
    %49 = arith.truncf %48 : vector<128x4xf32> to vector<128x4xbf16>
    %c1_65 = arith.constant 1 : index
    %c2_66 = arith.constant 2 : index
    %c0_67 = arith.constant 0 : index
    %c0_68 = arith.constant 0 : index
    %50 = vector.load %arg2[%c1_65, %c2_66, %c0_67, %c0_68] : memref<3x3x4x8xbf16, #tpu.memory_space<vmem>>, vector<1x1x4x8xbf16>
    %51 = vector.shape_cast %50 : vector<1x1x4x8xbf16> to vector<4x8xbf16>
    %cst_69 = arith.constant dense<0.000000e+00> : vector<128x8xf32>
    %52 = tpu.matmul %49, %51, %cst_69 {dimension_numbers = #tpu.dot_dimension_numbers<[1], [0], [0], [1], [0, 0, 1, 1], [], []>} : vector<128x4xbf16>, vector<4x8xbf16>, vector<128x8xf32> -> vector<128x8xf32>
    %53 = arith.addf %46, %52 : vector<128x8xf32>
    %c0_70 = arith.constant 0 : index
    %c2_71 = arith.constant 2 : index
    %c0_72 = arith.constant 0 : index
    %c0_73 = arith.constant 0 : index
    %54 = vector.load %arg9[%c0_70, %c2_71, %c0_72, %c0_73] : memref<2x10x10x4xf32, #tpu.memory_space<vmem>>, vector<2x8x8x4xf32>
    %55 = vector.shape_cast %54 : vector<2x8x8x4xf32> to vector<128x4xf32>
    %56 = arith.truncf %55 : vector<128x4xf32> to vector<128x4xbf16>
    %c2_74 = arith.constant 2 : index
    %c0_75 = arith.constant 0 : index
    %c0_76 = arith.constant 0 : index
    %c0_77 = arith.constant 0 : index
    %57 = vector.load %arg2[%c2_74, %c0_75, %c0_76, %c0_77] : memref<3x3x4x8xbf16, #tpu.memory_space<vmem>>, vector<1x1x4x8xbf16>
    %58 = vector.shape_cast %57 : vector<1x1x4x8xbf16> to vector<4x8xbf16>
    %cst_78 = arith.constant dense<0.000000e+00> : vector<128x8xf32>
    %59 = tpu.matmul %56, %58, %cst_78 {dimension_numbers = #tpu.dot_dimension_numbers<[1], [0], [0], [1], [0, 0, 1, 1], [], []>} : vector<128x4xbf16>, vector<4x8xbf16>, vector<128x8xf32> -> vector<128x8xf32>
    %60 = arith.addf %53, %59 : vector<128x8xf32>
    %c0_79 = arith.constant 0 : index
    %c2_80 = arith.constant 2 : index
    %c1_81 = arith.constant 1 : index
    %c0_82 = arith.constant 0 : index
    %61 = vector.load %arg9[%c0_79, %c2_80, %c1_81, %c0_82] : memref<2x10x10x4xf32, #tpu.memory_space<vmem>>, vector<2x8x8x4xf32>
    %62 = vector.shape_cast %61 : vector<2x8x8x4xf32> to vector<128x4xf32>
    %63 = arith.truncf %62 : vector<128x4xf32> to vector<128x4xbf16>
    %c2_83 = arith.constant 2 : index
    %c1_84 = arith.constant 1 : index
    %c0_85 = arith.constant 0 : index
    %c0_86 = arith.constant 0 : index
    %64 = vector.load %arg2[%c2_83, %c1_84, %c0_85, %c0_86] : memref<3x3x4x8xbf16, #tpu.memory_space<vmem>>, vector<1x1x4x8xbf16>
    %65 = vector.shape_cast %64 : vector<1x1x4x8xbf16> to vector<4x8xbf16>
    %cst_87 = arith.constant dense<0.000000e+00> : vector<128x8xf32>
    %66 = tpu.matmul %63, %65, %cst_87 {dimension_numbers = #tpu.dot_dimension_numbers<[1], [0], [0], [1], [0, 0, 1, 1], [], []>} : vector<128x4xbf16>, vector<4x8xbf16>, vector<128x8xf32> -> vector<128x8xf32>
    %67 = arith.addf %60, %66 : vector<128x8xf32>
    %c0_88 = arith.constant 0 : index
    %c2_89 = arith.constant 2 : index
    %c2_90 = arith.constant 2 : index
    %c0_91 = arith.constant 0 : index
    %68 = vector.load %arg9[%c0_88, %c2_89, %c2_90, %c0_91] : memref<2x10x10x4xf32, #tpu.memory_space<vmem>>, vector<2x8x8x4xf32>
    %69 = vector.shape_cast %68 : vector<2x8x8x4xf32> to vector<128x4xf32>
    %70 = arith.truncf %69 : vector<128x4xf32> to vector<128x4xbf16>
    %c2_92 = arith.constant 2 : index
    %c2_93 = arith.constant 2 : index
    %c0_94 = arith.constant 0 : index
    %c0_95 = arith.constant 0 : index
    %71 = vector.load %arg2[%c2_92, %c2_93, %c0_94, %c0_95] : memref<3x3x4x8xbf16, #tpu.memory_space<vmem>>, vector<1x1x4x8xbf16>
    %72 = vector.shape_cast %71 : vector<1x1x4x8xbf16> to vector<4x8xbf16>
    %cst_96 = arith.constant dense<0.000000e+00> : vector<128x8xf32>
    %73 = tpu.matmul %70, %72, %cst_96 {dimension_numbers = #tpu.dot_dimension_numbers<[1], [0], [0], [1], [0, 0, 1, 1], [], []>} : vector<128x4xbf16>, vector<4x8xbf16>, vector<128x8xf32> -> vector<128x8xf32>
    %74 = arith.addf %67, %73 : vector<128x8xf32>
    %c0_97 = arith.constant 0 : index
    %c0_98 = arith.constant 0 : index
    %75 = vector.load %arg4[%c0_97, %c0_98] : memref<1x8xf32, #tpu.memory_space<vmem>>, vector<1x8xf32>
    %c0_99 = arith.constant 0 : index
    %c0_100 = arith.constant 0 : index
    %76 = vector.load %arg5[%c0_99, %c0_100] : memref<1x8xf32, #tpu.memory_space<vmem>>, vector<1x8xf32>
    %cst_101 = arith.constant dense<0.000000e+00> : vector<8xf32>
    %77 = vector.multi_reduction <add>, %74, %cst_101 [0] : vector<128x8xf32> to vector<8xf32>
    %78 = vector.shape_cast %77 : vector<8xf32> to vector<1x8xf32>
    %cst_102 = arith.constant 7.812500e-03 : f32
    %79 = vector.broadcast %cst_102 : f32 to vector<1x8xf32>
    %80 = arith.mulf %78, %79 : vector<1x8xf32>
    %81 = vector.broadcast %80 : vector<1x8xf32> to vector<128x8xf32>
    %82 = arith.subf %74, %81 : vector<128x8xf32>
    %83 = arith.mulf %82, %82 : vector<128x8xf32>
    %cst_103 = arith.constant dense<0.000000e+00> : vector<8xf32>
    %84 = vector.multi_reduction <add>, %83, %cst_103 [0] : vector<128x8xf32> to vector<8xf32>
    %85 = vector.shape_cast %84 : vector<8xf32> to vector<1x8xf32>
    %cst_104 = arith.constant 7.812500e-03 : f32
    %86 = vector.broadcast %cst_104 : f32 to vector<1x8xf32>
    %87 = arith.mulf %85, %86 : vector<1x8xf32>
    %cst_105 = arith.constant 9.99999974E-6 : f32
    %88 = vector.broadcast %cst_105 : f32 to vector<1x8xf32>
    %89 = arith.addf %87, %88 : vector<1x8xf32>
    %90 = math.rsqrt %89 : vector<1x8xf32>
    %91 = arith.mulf %75, %90 : vector<1x8xf32>
    %92 = vector.broadcast %91 : vector<1x8xf32> to vector<128x8xf32>
    %93 = arith.mulf %82, %92 : vector<128x8xf32>
    %94 = vector.broadcast %76 : vector<1x8xf32> to vector<128x8xf32>
    %95 = arith.addf %93, %94 : vector<128x8xf32>
    %cst_106 = arith.constant 0.000000e+00 : f32
    %96 = vector.broadcast %cst_106 : f32 to vector<128x8xf32>
    %97 = arith.maximumf %95, %96 : vector<128x8xf32>
    %cst_107 = arith.constant 0.000000e+00 : f32
    %98 = vector.broadcast %cst_107 : f32 to vector<2x10x10x8xf32>
    %c0_108 = arith.constant 0 : index
    %c0_109 = arith.constant 0 : index
    %c0_110 = arith.constant 0 : index
    %c0_111 = arith.constant 0 : index
    %99 = vector.load %arg10[%c0_108, %c0_109, %c0_110, %c0_111] : memref<2x10x10x8xf32, #tpu.memory_space<vmem>>, vector<2x10x10x8xf32>
    tpu.vector_store %arg10[%c0_108, %c0_109, %c0_110, %c0_111], %98 {strides = array<i32>} : memref<2x10x10x8xf32, #tpu.memory_space<vmem>>, vector<2x10x10x8xf32>,
    %100 = vector.shape_cast %97 : vector<128x8xf32> to vector<2x8x8x8xf32>
    %c0_112 = arith.constant 0 : index
    %c1_113 = arith.constant 1 : index
    %c1_114 = arith.constant 1 : index
    %c0_115 = arith.constant 0 : index
    %101 = vector.load %arg10[%c0_112, %c1_113, %c1_114, %c0_115] : memref<2x10x10x8xf32, #tpu.memory_space<vmem>>, vector<2x8x8x8xf32>
    tpu.vector_store %arg10[%c0_112, %c1_113, %c1_114, %c0_115], %100 {strides = array<i32>} : memref<2x10x10x8xf32, #tpu.memory_space<vmem>>, vector<2x8x8x8xf32>,
    %cst_116 = arith.constant 0.000000e+00 : f32
    %102 = vector.broadcast %cst_116 : f32 to vector<128x8xf32>
    %c0_117 = arith.constant 0 : index
    %c0_118 = arith.constant 0 : index
    %c0_119 = arith.constant 0 : index
    %c0_120 = arith.constant 0 : index
    %103 = vector.load %arg10[%c0_117, %c0_118, %c0_119, %c0_120] : memref<2x10x10x8xf32, #tpu.memory_space<vmem>>, vector<2x8x8x8xf32>
    %104 = vector.shape_cast %103 : vector<2x8x8x8xf32> to vector<128x8xf32>
    %105 = arith.truncf %104 : vector<128x8xf32> to vector<128x8xbf16>
    %c0_121 = arith.constant 0 : index
    %c0_122 = arith.constant 0 : index
    %c0_123 = arith.constant 0 : index
    %c0_124 = arith.constant 0 : index
    %106 = vector.load %arg3[%c0_121, %c0_122, %c0_123, %c0_124] : memref<3x3x8x8xbf16, #tpu.memory_space<vmem>>, vector<1x1x8x8xbf16>
    %107 = vector.shape_cast %106 : vector<1x1x8x8xbf16> to vector<8x8xbf16>
    %cst_125 = arith.constant dense<0.000000e+00> : vector<128x8xf32>
    %108 = tpu.matmul %105, %107, %cst_125 {dimension_numbers = #tpu.dot_dimension_numbers<[1], [0], [0], [1], [0, 0, 1, 1], [], []>} : vector<128x8xbf16>, vector<8x8xbf16>, vector<128x8xf32> -> vector<128x8xf32>
    %109 = arith.addf %102, %108 : vector<128x8xf32>
    %c0_126 = arith.constant 0 : index
    %c0_127 = arith.constant 0 : index
    %c1_128 = arith.constant 1 : index
    %c0_129 = arith.constant 0 : index
    %110 = vector.load %arg10[%c0_126, %c0_127, %c1_128, %c0_129] : memref<2x10x10x8xf32, #tpu.memory_space<vmem>>, vector<2x8x8x8xf32>
    %111 = vector.shape_cast %110 : vector<2x8x8x8xf32> to vector<128x8xf32>
    %112 = arith.truncf %111 : vector<128x8xf32> to vector<128x8xbf16>
    %c0_130 = arith.constant 0 : index
    %c1_131 = arith.constant 1 : index
    %c0_132 = arith.constant 0 : index
    %c0_133 = arith.constant 0 : index
    %113 = vector.load %arg3[%c0_130, %c1_131, %c0_132, %c0_133] : memref<3x3x8x8xbf16, #tpu.memory_space<vmem>>, vector<1x1x8x8xbf16>
    %114 = vector.shape_cast %113 : vector<1x1x8x8xbf16> to vector<8x8xbf16>
    %cst_134 = arith.constant dense<0.000000e+00> : vector<128x8xf32>
    %115 = tpu.matmul %112, %114, %cst_134 {dimension_numbers = #tpu.dot_dimension_numbers<[1], [0], [0], [1], [0, 0, 1, 1], [], []>} : vector<128x8xbf16>, vector<8x8xbf16>, vector<128x8xf32> -> vector<128x8xf32>
    %116 = arith.addf %109, %115 : vector<128x8xf32>
    %c0_135 = arith.constant 0 : index
    %c0_136 = arith.constant 0 : index
    %c2_137 = arith.constant 2 : index
    %c0_138 = arith.constant 0 : index
    %117 = vector.load %arg10[%c0_135, %c0_136, %c2_137, %c0_138] : memref<2x10x10x8xf32, #tpu.memory_space<vmem>>, vector<2x8x8x8xf32>
    %118 = vector.shape_cast %117 : vector<2x8x8x8xf32> to vector<128x8xf32>
    %119 = arith.truncf %118 : vector<128x8xf32> to vector<128x8xbf16>
    %c0_139 = arith.constant 0 : index
    %c2_140 = arith.constant 2 : index
    %c0_141 = arith.constant 0 : index
    %c0_142 = arith.constant 0 : index
    %120 = vector.load %arg3[%c0_139, %c2_140, %c0_141, %c0_142] : memref<3x3x8x8xbf16, #tpu.memory_space<vmem>>, vector<1x1x8x8xbf16>
    %121 = vector.shape_cast %120 : vector<1x1x8x8xbf16> to vector<8x8xbf16>
    %cst_143 = arith.constant dense<0.000000e+00> : vector<128x8xf32>
    %122 = tpu.matmul %119, %121, %cst_143 {dimension_numbers = #tpu.dot_dimension_numbers<[1], [0], [0], [1], [0, 0, 1, 1], [], []>} : vector<128x8xbf16>, vector<8x8xbf16>, vector<128x8xf32> -> vector<128x8xf32>
    %123 = arith.addf %116, %122 : vector<128x8xf32>
    %c0_144 = arith.constant 0 : index
    %c1_145 = arith.constant 1 : index
    %c0_146 = arith.constant 0 : index
    %c0_147 = arith.constant 0 : index
    %124 = vector.load %arg10[%c0_144, %c1_145, %c0_146, %c0_147] : memref<2x10x10x8xf32, #tpu.memory_space<vmem>>, vector<2x8x8x8xf32>
    %125 = vector.shape_cast %124 : vector<2x8x8x8xf32> to vector<128x8xf32>
    %126 = arith.truncf %125 : vector<128x8xf32> to vector<128x8xbf16>
    %c1_148 = arith.constant 1 : index
    %c0_149 = arith.constant 0 : index
    %c0_150 = arith.constant 0 : index
    %c0_151 = arith.constant 0 : index
    %127 = vector.load %arg3[%c1_148, %c0_149, %c0_150, %c0_151] : memref<3x3x8x8xbf16, #tpu.memory_space<vmem>>, vector<1x1x8x8xbf16>
    %128 = vector.shape_cast %127 : vector<1x1x8x8xbf16> to vector<8x8xbf16>
    %cst_152 = arith.constant dense<0.000000e+00> : vector<128x8xf32>
    %129 = tpu.matmul %126, %128, %cst_152 {dimension_numbers = #tpu.dot_dimension_numbers<[1], [0], [0], [1], [0, 0, 1, 1], [], []>} : vector<128x8xbf16>, vector<8x8xbf16>, vector<128x8xf32> -> vector<128x8xf32>
    %130 = arith.addf %123, %129 : vector<128x8xf32>
    %c0_153 = arith.constant 0 : index
    %c1_154 = arith.constant 1 : index
    %c1_155 = arith.constant 1 : index
    %c0_156 = arith.constant 0 : index
    %131 = vector.load %arg10[%c0_153, %c1_154, %c1_155, %c0_156] : memref<2x10x10x8xf32, #tpu.memory_space<vmem>>, vector<2x8x8x8xf32>
    %132 = vector.shape_cast %131 : vector<2x8x8x8xf32> to vector<128x8xf32>
    %133 = arith.truncf %132 : vector<128x8xf32> to vector<128x8xbf16>
    %c1_157 = arith.constant 1 : index
    %c1_158 = arith.constant 1 : index
    %c0_159 = arith.constant 0 : index
    %c0_160 = arith.constant 0 : index
    %134 = vector.load %arg3[%c1_157, %c1_158, %c0_159, %c0_160] : memref<3x3x8x8xbf16, #tpu.memory_space<vmem>>, vector<1x1x8x8xbf16>
    %135 = vector.shape_cast %134 : vector<1x1x8x8xbf16> to vector<8x8xbf16>
    %cst_161 = arith.constant dense<0.000000e+00> : vector<128x8xf32>
    %136 = tpu.matmul %133, %135, %cst_161 {dimension_numbers = #tpu.dot_dimension_numbers<[1], [0], [0], [1], [0, 0, 1, 1], [], []>} : vector<128x8xbf16>, vector<8x8xbf16>, vector<128x8xf32> -> vector<128x8xf32>
    %137 = arith.addf %130, %136 : vector<128x8xf32>
    %c0_162 = arith.constant 0 : index
    %c1_163 = arith.constant 1 : index
    %c2_164 = arith.constant 2 : index
    %c0_165 = arith.constant 0 : index
    %138 = vector.load %arg10[%c0_162, %c1_163, %c2_164, %c0_165] : memref<2x10x10x8xf32, #tpu.memory_space<vmem>>, vector<2x8x8x8xf32>
    %139 = vector.shape_cast %138 : vector<2x8x8x8xf32> to vector<128x8xf32>
    %140 = arith.truncf %139 : vector<128x8xf32> to vector<128x8xbf16>
    %c1_166 = arith.constant 1 : index
    %c2_167 = arith.constant 2 : index
    %c0_168 = arith.constant 0 : index
    %c0_169 = arith.constant 0 : index
    %141 = vector.load %arg3[%c1_166, %c2_167, %c0_168, %c0_169] : memref<3x3x8x8xbf16, #tpu.memory_space<vmem>>, vector<1x1x8x8xbf16>
    %142 = vector.shape_cast %141 : vector<1x1x8x8xbf16> to vector<8x8xbf16>
    %cst_170 = arith.constant dense<0.000000e+00> : vector<128x8xf32>
    %143 = tpu.matmul %140, %142, %cst_170 {dimension_numbers = #tpu.dot_dimension_numbers<[1], [0], [0], [1], [0, 0, 1, 1], [], []>} : vector<128x8xbf16>, vector<8x8xbf16>, vector<128x8xf32> -> vector<128x8xf32>
    %144 = arith.addf %137, %143 : vector<128x8xf32>
    %c0_171 = arith.constant 0 : index
    %c2_172 = arith.constant 2 : index
    %c0_173 = arith.constant 0 : index
    %c0_174 = arith.constant 0 : index
    %145 = vector.load %arg10[%c0_171, %c2_172, %c0_173, %c0_174] : memref<2x10x10x8xf32, #tpu.memory_space<vmem>>, vector<2x8x8x8xf32>
    %146 = vector.shape_cast %145 : vector<2x8x8x8xf32> to vector<128x8xf32>
    %147 = arith.truncf %146 : vector<128x8xf32> to vector<128x8xbf16>
    %c2_175 = arith.constant 2 : index
    %c0_176 = arith.constant 0 : index
    %c0_177 = arith.constant 0 : index
    %c0_178 = arith.constant 0 : index
    %148 = vector.load %arg3[%c2_175, %c0_176, %c0_177, %c0_178] : memref<3x3x8x8xbf16, #tpu.memory_space<vmem>>, vector<1x1x8x8xbf16>
    %149 = vector.shape_cast %148 : vector<1x1x8x8xbf16> to vector<8x8xbf16>
    %cst_179 = arith.constant dense<0.000000e+00> : vector<128x8xf32>
    %150 = tpu.matmul %147, %149, %cst_179 {dimension_numbers = #tpu.dot_dimension_numbers<[1], [0], [0], [1], [0, 0, 1, 1], [], []>} : vector<128x8xbf16>, vector<8x8xbf16>, vector<128x8xf32> -> vector<128x8xf32>
    %151 = arith.addf %144, %150 : vector<128x8xf32>
    %c0_180 = arith.constant 0 : index
    %c2_181 = arith.constant 2 : index
    %c1_182 = arith.constant 1 : index
    %c0_183 = arith.constant 0 : index
    %152 = vector.load %arg10[%c0_180, %c2_181, %c1_182, %c0_183] : memref<2x10x10x8xf32, #tpu.memory_space<vmem>>, vector<2x8x8x8xf32>
    %153 = vector.shape_cast %152 : vector<2x8x8x8xf32> to vector<128x8xf32>
    %154 = arith.truncf %153 : vector<128x8xf32> to vector<128x8xbf16>
    %c2_184 = arith.constant 2 : index
    %c1_185 = arith.constant 1 : index
    %c0_186 = arith.constant 0 : index
    %c0_187 = arith.constant 0 : index
    %155 = vector.load %arg3[%c2_184, %c1_185, %c0_186, %c0_187] : memref<3x3x8x8xbf16, #tpu.memory_space<vmem>>, vector<1x1x8x8xbf16>
    %156 = vector.shape_cast %155 : vector<1x1x8x8xbf16> to vector<8x8xbf16>
    %cst_188 = arith.constant dense<0.000000e+00> : vector<128x8xf32>
    %157 = tpu.matmul %154, %156, %cst_188 {dimension_numbers = #tpu.dot_dimension_numbers<[1], [0], [0], [1], [0, 0, 1, 1], [], []>} : vector<128x8xbf16>, vector<8x8xbf16>, vector<128x8xf32> -> vector<128x8xf32>
    %158 = arith.addf %151, %157 : vector<128x8xf32>
    %c0_189 = arith.constant 0 : index
    %c2_190 = arith.constant 2 : index
    %c2_191 = arith.constant 2 : index
    %c0_192 = arith.constant 0 : index
    %159 = vector.load %arg10[%c0_189, %c2_190, %c2_191, %c0_192] : memref<2x10x10x8xf32, #tpu.memory_space<vmem>>, vector<2x8x8x8xf32>
    %160 = vector.shape_cast %159 : vector<2x8x8x8xf32> to vector<128x8xf32>
    %161 = arith.truncf %160 : vector<128x8xf32> to vector<128x8xbf16>
    %c2_193 = arith.constant 2 : index
    %c2_194 = arith.constant 2 : index
    %c0_195 = arith.constant 0 : index
    %c0_196 = arith.constant 0 : index
    %162 = vector.load %arg3[%c2_193, %c2_194, %c0_195, %c0_196] : memref<3x3x8x8xbf16, #tpu.memory_space<vmem>>, vector<1x1x8x8xbf16>
    %163 = vector.shape_cast %162 : vector<1x1x8x8xbf16> to vector<8x8xbf16>
    %cst_197 = arith.constant dense<0.000000e+00> : vector<128x8xf32>
    %164 = tpu.matmul %161, %163, %cst_197 {dimension_numbers = #tpu.dot_dimension_numbers<[1], [0], [0], [1], [0, 0, 1, 1], [], []>} : vector<128x8xbf16>, vector<8x8xbf16>, vector<128x8xf32> -> vector<128x8xf32>
    %165 = arith.addf %158, %164 : vector<128x8xf32>
    %c0_198 = arith.constant 0 : index
    %c0_199 = arith.constant 0 : index
    %166 = vector.load %arg6[%c0_198, %c0_199] : memref<1x8xf32, #tpu.memory_space<vmem>>, vector<1x8xf32>
    %c0_200 = arith.constant 0 : index
    %c0_201 = arith.constant 0 : index
    %167 = vector.load %arg7[%c0_200, %c0_201] : memref<1x8xf32, #tpu.memory_space<vmem>>, vector<1x8xf32>
    %cst_202 = arith.constant dense<0.000000e+00> : vector<8xf32>
    %168 = vector.multi_reduction <add>, %165, %cst_202 [0] : vector<128x8xf32> to vector<8xf32>
    %169 = vector.shape_cast %168 : vector<8xf32> to vector<1x8xf32>
    %cst_203 = arith.constant 7.812500e-03 : f32
    %170 = vector.broadcast %cst_203 : f32 to vector<1x8xf32>
    %171 = arith.mulf %169, %170 : vector<1x8xf32>
    %172 = vector.broadcast %171 : vector<1x8xf32> to vector<128x8xf32>
    %173 = arith.subf %165, %172 : vector<128x8xf32>
    %174 = arith.mulf %173, %173 : vector<128x8xf32>
    %cst_204 = arith.constant dense<0.000000e+00> : vector<8xf32>
    %175 = vector.multi_reduction <add>, %174, %cst_204 [0] : vector<128x8xf32> to vector<8xf32>
    %176 = vector.shape_cast %175 : vector<8xf32> to vector<1x8xf32>
    %cst_205 = arith.constant 7.812500e-03 : f32
    %177 = vector.broadcast %cst_205 : f32 to vector<1x8xf32>
    %178 = arith.mulf %176, %177 : vector<1x8xf32>
    %cst_206 = arith.constant 9.99999974E-6 : f32
    %179 = vector.broadcast %cst_206 : f32 to vector<1x8xf32>
    %180 = arith.addf %178, %179 : vector<1x8xf32>
    %181 = math.rsqrt %180 : vector<1x8xf32>
    %182 = arith.mulf %166, %181 : vector<1x8xf32>
    %183 = vector.broadcast %182 : vector<1x8xf32> to vector<128x8xf32>
    %184 = arith.mulf %173, %183 : vector<128x8xf32>
    %185 = vector.broadcast %167 : vector<1x8xf32> to vector<128x8xf32>
    %186 = arith.addf %184, %185 : vector<128x8xf32>
    %cst_207 = arith.constant 0.000000e+00 : f32
    %187 = vector.broadcast %cst_207 : f32 to vector<128x8xf32>
    %188 = arith.maximumf %186, %187 : vector<128x8xf32>
    %c0_208 = arith.constant 0 : index
    %c0_209 = arith.constant 0 : index
    %189 = vector.load %arg8[%c0_208, %c0_209] : memref<128x8xf32, #tpu.memory_space<vmem>>, vector<128x8xf32>
    tpu.vector_store %arg8[%c0_208, %c0_209], %188 {strides = array<i32>} : memref<128x8xf32, #tpu.memory_space<vmem>>, vector<128x8xf32>,
    return
  }
  func.func @transform_0(%arg0: i32) -> (i32, i32, i32, i32, i32) {
    %c0_i32 = arith.constant 0 : i32
    %c0_i32_0 = arith.constant 0 : i32
    %c0_i32_1 = arith.constant 0 : i32
    %c0_i32_2 = arith.constant 0 : i32
    %c0_i32_3 = arith.constant 0 : i32
    %c0_i32_4 = arith.constant 0 : i32
    return %c0_i32, %c0_i32_0, %c0_i32_1, %c0_i32_2, %c0_i32_3 : i32, i32, i32, i32, i32
  }
  func.func @transform_1(%arg0: i32) -> (i32, i32, i32, i32) {
    %c0_i32 = arith.constant 0 : i32
    %c0_i32_0 = arith.constant 0 : i32
    %c0_i32_1 = arith.constant 0 : i32
    %c0_i32_2 = arith.constant 0 : i32
    %c0_i32_3 = arith.constant 0 : i32
    return %c0_i32, %c0_i32_0, %c0_i32_1, %c0_i32_2 : i32, i32, i32, i32
  }
  func.func @transform_2(%arg0: i32) -> (i32, i32, i32, i32) {
    %c0_i32 = arith.constant 0 : i32
    %c0_i32_0 = arith.constant 0 : i32
    %c0_i32_1 = arith.constant 0 : i32
    %c0_i32_2 = arith.constant 0 : i32
    %c0_i32_3 = arith.constant 0 : i32
    return %c0_i32, %c0_i32_0, %c0_i32_1, %c0_i32_2 : i32, i32, i32, i32
  }
  func.func @transform_3(%arg0: i32) -> (i32, i32) {
    %c0_i32 = arith.constant 0 : i32
    %c0_i32_0 = arith.constant 0 : i32
    %c0_i32_1 = arith.constant 0 : i32
    return %c0_i32, %c0_i32_0 : i32, i32
  }
  func.func @transform_4(%arg0: i32) -> (i32, i32) {
    %c0_i32 = arith.constant 0 : i32
    %c0_i32_0 = arith.constant 0 : i32
    %c0_i32_1 = arith.constant 0 : i32
    return %c0_i32, %c0_i32_0 : i32, i32
  }
  func.func @transform_5(%arg0: i32) -> (i32, i32) {
    %c0_i32 = arith.constant 0 : i32
    %c0_i32_0 = arith.constant 0 : i32
    %c0_i32_1 = arith.constant 0 : i32
    return %c0_i32, %c0_i32_0 : i32, i32
  }
  func.func @transform_6(%arg0: i32) -> (i32, i32) {
    %c0_i32 = arith.constant 0 : i32
    %c0_i32_0 = arith.constant 0 : i32
    %c0_i32_1 = arith.constant 0 : i32
    return %c0_i32, %c0_i32_0 : i32, i32
  }
  func.func @transform_7(%arg0: i32) -> (i32, i32) {
    %c0_i32 = arith.constant 0 : i32
    %c0_i32_0 = arith.constant 0 : i32
    %c0_i32_1 = arith.constant 0 : i32
    return %c0_i32, %c0_i32_0 : i32, i32
  }
}

</mosaic_0001>

<bundles_post_ra>
// kernel: down_forward.1
= control target key start
LH: loop header
LB: loop body
LE: loop exit
PB: predicated region body
PF: predicated region fallthrough
CT: control target
= control target key end

     0   :  { %vm156_vm0 = vcmask 31744   ;;  %vm158_vm1 = vcmask 25600   ;;  %v5929_v3 = vmov 0.0   ;;  %s4511_s17 = smov 124   ;;  %vm290_vm2 = vcmask 1041408   ;;  %s5921_s0 = inlined_call_operand.vmem [shape: f32[2,8,2,8,8], index: 0, kind: input, shape index: {}]   ;;  %s5922_s1 = inlined_call_operand.vmem [shape: bf16[3,3,4,8], index: 1, kind: input, shape index: {}]   ;;  %s5923_s2 = inlined_call_operand.vmem [shape: bf16[3,3,8,8], index: 2, kind: input, shape index: {}]   ;;  %s5924_s3 = inlined_call_operand.vmem [shape: f32[1,8], index: 3, kind: input, shape index: {}]   ;;  %s5925_s4 = inlined_call_operand.vmem [shape: f32[1,8], index: 4, kind: input, shape index: {}]   ;;  %s5926_s5 = inlined_call_operand.vmem [shape: f32[1,8], index: 5, kind: input, shape index: {}]   ;;  %s5927_s6 = inlined_call_operand.vmem [shape: f32[1,8], index: 6, kind: input, shape index: {}]   ;;  %s5928_s7 = inlined_call_operand.vmem [shape: f32[128,8], index: 7, kind: output, shape index: {}]  }
   0x1   :  { %v29_v0 = vld [vmem:[%s5921_s0 + $0x20] sm:$0xff]  ;;  %v3568_v1 = vld [vmem:[%s5921_s0 + $0x28] sm:$0xff]  ;;  %164 = vst.msk [vmem:[#allocation2 + $0x30] sm:$0xff] %vm156_vm0, %v5929_v3  ;;  %157 = vst.msk [vmem:[#allocation2] sm:$0xff] %vm156_vm0, %v5929_v3  ;;  %vm1680_vm3 = vcmask 64512   ;;  %vm1853_vm4 = vcmask 58368  }
   0x2   :  { %v27_v2 = vld [vmem:[%s5921_s0] sm:$0xff]  ;;  %165 = vst.msk [vmem:[#allocation2 + $0x38] sm:$0x3] %vm158_vm1, %v5929_v3  ;;  %159 = vst.msk [vmem:[#allocation2 + $0x8] sm:$0x3] %vm158_vm1, %v5929_v3  ;;  %v4641_v4 = vmax.f32 %v29_v0, %v3568_v1  ;;  %v3566_v5 = vld [vmem:[%s5921_s0 + $0x8] sm:$0xff] }
   0x3   :  { %160 = vst.msk [vmem:[#allocation2 + $0x10] sm:$0xff] %vm156_vm0, %v5929_v3  ;;  %162 = vst.msk [vmem:[#allocation2 + $0x20] sm:$0xff] %vm156_vm0, %v5929_v3  ;;  %v30_v6 = vld [vmem:[%s5921_s0 + $0x30] sm:$0xff]  ;;  %v3569_v7 = vld [vmem:[%s5921_s0 + $0x38] sm:$0xff]  ;;  %v4652_v8 = vmax.f32 %v27_v2, %v3566_v5  ;;  %vm1985_vm5 = vcmask 1043456  }
   0x4   :  { %161 = vst.msk [vmem:[#allocation2 + $0x18] sm:$0x3] %vm158_vm1, %v5929_v3  ;;  %163 = vst.msk [vmem:[#allocation2 + $0x28] sm:$0x3] %vm158_vm1, %v5929_v3  ;;  %v28_v9 = vld [vmem:[%s5921_s0 + $0x10] sm:$0xff]  ;;  %v3567_v10 = vld [vmem:[%s5921_s0 + $0x18] sm:$0xff]  ;;  %96 = vrot.lane.b32.xlu1 %v4641_v4, %s4511_s17  ;;  %v4662_v11 = vmax.f32 %v30_v6, %v3569_v7 }
   0x5   :  { %166 = vst.msk [vmem:[#allocation2 + $0x40] sm:$0xff] %vm156_vm0, %v5929_v3  ;;  %168 = vst.msk [vmem:[#allocation2 + $0x50] sm:$0xff] %vm156_vm0, %v5929_v3  ;;  %92 = vrot.lane.b32.xlu0 %v4652_v8, %s4511_s17  ;;  %v4666_v12 = vmax.f32 %v28_v9, %v3567_v10  ;;  %v32_v13 = vld [vmem:[%s5921_s0 + $0x50] sm:$0xff]  ;;  %v3571_v14 = vld [vmem:[%s5921_s0 + $0x58] sm:$0xff] }
   0x6   :  { %167 = vst.msk [vmem:[#allocation2 + $0x48] sm:$0x3] %vm158_vm1, %v5929_v3  ;;  %169 = vst.msk [vmem:[#allocation2 + $0x58] sm:$0x3] %vm158_vm1, %v5929_v3  ;;  %v31_v15 = vld [vmem:[%s5921_s0 + $0x40] sm:$0xff]  ;;  %v3570_v16 = vld [vmem:[%s5921_s0 + $0x48] sm:$0xff]  ;;  %v4682_v17 = vmax.f32 %v32_v13, %v3571_v14 }
   0x7   :  { %170 = vst.msk [vmem:[#allocation2 + $0x60] sm:$0xff] %vm156_vm0, %v5929_v3  ;;  %172 = vst.msk [vmem:[#allocation2 + $0x70] sm:$0xff] %vm156_vm0, %v5929_v3  ;;  %v4686_v18 = vmax.f32 %v31_v15, %v3570_v16  ;;  %v35_v19 = vld [vmem:[%s5921_s0 + $0x80] sm:$0xff]  ;;  %v3574_v20 = vld [vmem:[%s5921_s0 + $0x88] sm:$0xff] }
   0x8   :  { %171 = vst.msk [vmem:[#allocation2 + $0x68] sm:$0x3] %vm158_vm1, %v5929_v3  ;;  %173 = vst.msk [vmem:[#allocation2 + $0x78] sm:$0x3] %vm158_vm1, %v5929_v3  ;;  %98 = vrot.lane.b32.xlu1 %v4662_v11, %s4511_s17  ;;  %v33_v21 = vld [vmem:[%s5921_s0 + $0x60] sm:$0xff]  ;;  %v3572_v22 = vld [vmem:[%s5921_s0 + $0x68] sm:$0xff]  ;;  %v4705_v24 = vmax.f32 %v35_v19, %v3574_v20 }
   0x9   :  { %174 = vst.msk [vmem:[#allocation2 + $0x80] sm:$0xff] %vm156_vm0, %v5929_v3  ;;  %176 = vst.msk [vmem:[#allocation2 + $0x90] sm:$0xff] %vm156_vm0, %v5929_v3  ;;  %94 = vrot.lane.b32.xlu0 %v4666_v12, %s4511_s17  ;;  %v3582_v23 = vld [vmem:[%s5922_s1 + $0x2] sm:$0x3]  ;;  %v4712_v26 = vld [vmem:[%s5922_s1] sm:$0x3]  ;;  %v4716_v27 = vmax.f32 %v33_v21, %v3572_v22 }
   0xa   :  { %175 = vst.msk [vmem:[#allocation2 + $0x88] sm:$0x3] %vm158_vm1, %v5929_v3  ;;  %177 = vst.msk [vmem:[#allocation2 + $0x98] sm:$0x3] %vm158_vm1, %v5929_v3  ;;  %4486 = vmatprep.subr.msk.bf16.mxu0 %vm290_vm2, %v3582_v23  ;;  %v292_v25 = vsel %vm290_vm2, %v3582_v23, 0  ;;  %v37_v28 = vld [vmem:[%s5921_s0 + $0xa0] sm:$0xff] }
   0xb   :  { %178 = vst.msk [vmem:[#allocation2 + $0xa0] sm:$0xff] %vm156_vm0, %v5929_v3  ;;  %180 = vst.msk [vmem:[#allocation2 + $0xb0] sm:$0xff] %vm156_vm0, %v5929_v3  ;;  %v3576_v29 = vld [vmem:[%s5921_s0 + $0xa8] sm:$0xff]  ;;  %3907 = vmatpush3.bf16.msra.mxu0 %v292_v25  ;;  %v36_v30 = vld [vmem:[%s5921_s0 + $0x90] sm:$0xff] }
   0xc   :  { %179 = vst.msk [vmem:[#allocation2 + $0xa8] sm:$0x3] %vm158_vm1, %v5929_v3  ;;  %181 = vst.msk [vmem:[#allocation2 + $0xb8] sm:$0x3] %vm158_vm1, %v5929_v3  ;;  %102 = vrot.lane.b32.xlu1 %v4682_v17, %s4511_s17  ;;  %v3575_v31 = vld [vmem:[%s5921_s0 + $0x98] sm:$0xff]  ;;  %4487 = vmatprep.subr.msk.bf16.mxu0 %vm290_vm2, %v4712_v26  ;;  %v4734_v32 = vmax.f32 %v37_v28, %v3576_v29  ;;  %v39_v34 = vld [vmem:[%s5921_s0 + $0xc0] sm:$0xff] }
   0xd   :  { %182 = vst.msk [vmem:[#allocation2 + $0xc0] sm:$0xff] %vm156_vm0, %v5929_v3  ;;  %184 = vst.msk [vmem:[#allocation2 + $0xd0] sm:$0xff] %vm156_vm0, %v5929_v3  ;;  %100 = vrot.lane.b32.xlu0 %v4686_v18, %s4511_s17  ;;  %v4738_v33 = vmax.f32 %v36_v30, %v3575_v31  ;;  %v3578_v35 = vld [vmem:[%s5921_s0 + $0xc8] sm:$0xff]  ;;  %v38_v36 = vld [vmem:[%s5921_s0 + $0xb0] sm:$0xff] }
   0xe   :  { %183 = vst.msk [vmem:[#allocation2 + $0xc8] sm:$0x3] %vm158_vm1, %v5929_v3  ;;  %185 = vst.msk [vmem:[#allocation2 + $0xd8] sm:$0x3] %vm158_vm1, %v5929_v3  ;;  %v3577_v37 = vld [vmem:[%s5921_s0 + $0xb8] sm:$0xff]  ;;  %v4754_v38 = vmax.f32 %v39_v34, %v3578_v35  ;;  %v41_v40 = vld [vmem:[%s5921_s0 + $0xe0] sm:$0xff] }
   0xf   :  { %186 = vst.msk [vmem:[#allocation2 + $0xe0] sm:$0xff] %vm156_vm0, %v5929_v3  ;;  %188 = vst.msk [vmem:[#allocation2 + $0xf0] sm:$0xff] %vm156_vm0, %v5929_v3  ;;  %v4758_v39 = vmax.f32 %v38_v36, %v3577_v37  ;;  %v3580_v41 = vld [vmem:[%s5921_s0 + $0xe8] sm:$0xff]  ;;  %v40_v42 = vld [vmem:[%s5921_s0 + $0xd0] sm:$0xff] }
  0x10   :  { %187 = vst.msk [vmem:[#allocation2 + $0xe8] sm:$0x3] %vm158_vm1, %v5929_v3  ;;  %189 = vst.msk [vmem:[#allocation2 + $0xf8] sm:$0x3] %vm158_vm1, %v5929_v3  ;;  %108 = vrot.lane.b32.xlu1 %v4705_v24, %s4511_s17  ;;  %v3579_v43 = vld [vmem:[%s5921_s0 + $0xd8] sm:$0xff]  ;;  %v4774_v44 = vmax.f32 %v41_v40, %v3580_v41  ;;  %v42_v46 = vld [vmem:[%s5921_s0 + $0xf0] sm:$0xff] }
  0x11   :  { %190 = vst.msk [vmem:[#allocation2 + $0x100] sm:$0xff] %vm156_vm0, %v5929_v3  ;;  %192 = vst.msk [vmem:[#allocation2 + $0x110] sm:$0xff] %vm156_vm0, %v5929_v3  ;;  %104 = vrot.lane.b32.xlu0 %v4716_v27, %s4511_s17  ;;  %v4778_v45 = vmax.f32 %v40_v42, %v3579_v43  ;;  %v3581_v47 = vld [vmem:[%s5921_s0 + $0xf8] sm:$0xff]  ;;  %v34_v48 = vld [vmem:[%s5921_s0 + $0x70] sm:$0xff] }
  0x12   :  { %191 = vst.msk [vmem:[#allocation2 + $0x108] sm:$0x3] %vm158_vm1, %v5929_v3  ;;  %193 = vst.msk [vmem:[#allocation2 + $0x118] sm:$0x3] %vm158_vm1, %v5929_v3  ;;  %v3573_v49 = vld [vmem:[%s5921_s0 + $0x78] sm:$0xff]  ;;  %v4794_v50 = vmax.f32 %v42_v46, %v3581_v47  ;;  %v240_v63 = vld [vmem:[#allocation2 + $0x1] sm:$0xff] }
  0x13   :  { %194 = vst.msk [vmem:[#allocation2 + $0x120] sm:$0xff] %vm156_vm0, %v5929_v3  ;;  %196 = vst.msk [vmem:[#allocation2 + $0x130] sm:$0xff] %vm156_vm0, %v5929_v3  ;;  %v4798_v51 = vmax.f32 %v34_v48, %v3573_v49  ;;  %v4852_v22 = vld [vmem:[%s5922_s1 + $0x4] sm:$0x3] }
  0x14   :  { %195 = vst.msk [vmem:[#allocation2 + $0x128] sm:$0x3] %vm158_vm1, %v5929_v3  ;;  %197 = vst.msk [vmem:[#allocation2 + $0x138] sm:$0x3] %vm158_vm1, %v5929_v3  ;;  %112 = vrot.lane.b32.xlu1 %v4734_v32, %s4511_s17 }
  0x15   :  { %110 = vrot.lane.b32.xlu0 %v4738_v33, %s4511_s17 }
  0x18   :  { %116 = vrot.lane.b32.xlu1 %v4754_v38, %s4511_s17 }
  0x19   :  { %114 = vrot.lane.b32.xlu0 %v4758_v39, %s4511_s17 }
  0x1c   :  { %120 = vrot.lane.b32.xlu1 %v4774_v44, %s4511_s17 }
  0x1d   :  { %118 = vrot.lane.b32.xlu0 %v4778_v45, %s4511_s17 }
  0x20   :  { %122 = vrot.lane.b32.xlu1 %v4794_v50, %s4511_s17 }
  0x21   :  { %106 = vrot.lane.b32.xlu0 %v4798_v51, %s4511_s17 }
  0x76   :  { %v97_v52 = vpop.permute.xlu1 %96 }
  0x77   :  { %v142_v53 = vmax.f32 %v4641_v4, %v97_v52  ;;  %v93_v54 = vpop.permute.xlu0 %92 }
  0x78   :  { %v140_v55 = vmax.f32 %v4652_v8, %v93_v54 }
  0x79   :  { %201 = vst.msk [vmem:[#allocation2 + $0x31] sm:$0xff] %vm156_vm0, %v142_v53 }
  0x7a   :  { %199 = vst.msk [vmem:[#allocation2 + $0x11] sm:$0xff] %vm156_vm0, %v140_v55  ;;  %v99_v56 = vpop.permute.xlu1 %98 }
  0x7b   :  { %v143_v57 = vmax.f32 %v4662_v11, %v99_v56  ;;  %v95_v58 = vpop.permute.xlu0 %94 }
  0x7c   :  { %v141_v59 = vmax.f32 %v4666_v12, %v95_v58 }
  0x7d   :  { %202 = vst.msk [vmem:[#allocation2 + $0x41] sm:$0xff] %vm156_vm0, %v143_v57 }
  0x7e   :  { %200 = vst.msk [vmem:[#allocation2 + $0x21] sm:$0xff] %vm156_vm0, %v141_v59  ;;  %v103_v60 = vpop.permute.xlu1 %102 }
  0x7f   :  { %v145_v61 = vmax.f32 %v4682_v17, %v103_v60  ;;  %v101_v62 = vpop.permute.xlu0 %100 }
  0x80   :  { %v144_v0 = vmax.f32 %v4686_v18, %v101_v62  ;;  %v4819_v5 = vld [vmem:[#allocation2 + $0x31] sm:$0xff]  ;;  %v416_v18 = vsel %vm290_vm2, %v4712_v26, 0 }
  0x81   :  { %204 = vst.msk [vmem:[#allocation2 + $0x61] sm:$0xff] %vm156_vm0, %v145_v61  ;;  %v4815_v1 = vld [vmem:[#allocation2 + $0x11] sm:$0xff] }
  0x82   :  { %203 = vst.msk [vmem:[#allocation2 + $0x51] sm:$0xff] %vm156_vm0, %v144_v0  ;;  %v109_v2 = vpop.permute.xlu1 %108  ;;  %v256_v4 = vpack.c.bf16 %v4815_v1, %v240_v63  ;;  %v4821_v6 = vld [vmem:[#allocation2 + $0x32] sm:$0xff] }
  0x83   :  { %v148_v7 = vmax.f32 %v4705_v24, %v109_v2  ;;  %v105_v8 = vpop.permute.xlu0 %104  ;;  %v4846_v19 = vld [vmem:[#allocation2 + $0x12] sm:$0xff] }
  0x84   :  { %v146_v9 = vmax.f32 %v4716_v27, %v105_v8  ;;  %3908 = vmatprep.mubr.msk.bf16.mxu0 %vm156_vm0, %v256_v4  ;;  %v4826_v10 = vld [vmem:[#allocation2 + $0x41] sm:$0xff] }
  0x85   :  { %v4828_v11 = vld [vmem:[#allocation2 + $0x42] sm:$0xff]  ;;  %207 = vst.msk [vmem:[#allocation2 + $0xb1] sm:$0xff] %vm156_vm0, %v148_v7 }
  0x86   :  { %v4831_v12 = vld [vmem:[#allocation2 + $0x21] sm:$0xff]  ;;  %205 = vst.msk [vmem:[#allocation2 + $0x71] sm:$0xff] %vm156_vm0, %v146_v9  ;;  %v113_v16 = vpop.permute.xlu1 %112 }
  0x87   :  { %v4833_v13 = vld [vmem:[#allocation2 + $0x22] sm:$0xff]  ;;  %v4842_v17 = vpack.c.bf16 %v4819_v5, %v4831_v12  ;;  %v150_v20 = vmax.f32 %v4734_v32, %v113_v16  ;;  %v111_v21 = vpop.permute.xlu0 %110 }
  0x88   :  { %v149_v25 = vmax.f32 %v4738_v33, %v111_v21  ;;  %v4861_v26 = vld [vmem:[#allocation2 + $0x61] sm:$0xff]  ;;  %v5000_v36 = vpack.c.bf16 %v4821_v6, %v4833_v13 }
  0x89   :  { %3909 = vmatmul.mubr.msk.bf16.vlgmr.msra.gmra.mrb[0].mxu0 %vm156_vm0, %v4842_v17  ;;  %v4863_v27 = vld [vmem:[#allocation2 + $0x62] sm:$0xff]  ;;  %209 = vst.msk [vmem:[#allocation2 + $0xd1] sm:$0xff] %vm156_vm0, %v150_v20  ;;  %v4866_v28 = vld [vmem:[#allocation2 + $0x51] sm:$0xff] }
  0x8a   :  { %3925 = vmatpush3.bf16.msra.mxu0 %v416_v18  ;;  %v4868_v29 = vld [vmem:[#allocation2 + $0x52] sm:$0xff]  ;;  %208 = vst.msk [vmem:[#allocation2 + $0xc1] sm:$0xff] %vm156_vm0, %v149_v25  ;;  %v117_v30 = vpop.permute.xlu1 %116  ;;  %v4873_v31 = vpack.c.bf16 %v4866_v28, %v4826_v10  ;;  %v248_v32 = vld [vmem:[#allocation2 + $0xa1] sm:$0xff] }
  0x8b   :  { %4488 = vmatprep.subr.msk.bf16.mxu0 %vm290_vm2, %v4852_v22  ;;  %v152_v33 = vmax.f32 %v4754_v38, %v117_v30  ;;  %v115_v34 = vpop.permute.xlu0 %114  ;;  %v215_v18 = vld [vmem:[#allocation2] sm:$0xff]  ;;  %v216_v20 = vld [vmem:[#allocation2 + $0x10] sm:$0xff]  ;;  %v5005_v24 = vpack.c.bf16 %v4868_v29, %v4828_v11  ;;  %v3617_v8 = vld [vmem:[%s5922_s1 + $0x8] sm:$0x3] }
  0x8c   :  { %v151_v37 = vmax.f32 %v4758_v39, %v115_v34  ;;  %3912 = vmatprep.mubr.msk.bf16.mxu0 %vm156_vm0, %v4873_v31  ;;  %v4885_v40 = vld [vmem:[#allocation2 + $0xb1] sm:$0xff]  ;;  %v231_v21 = vpack.c.bf16 %v216_v20, %v215_v18  ;;  %v217_v25 = vld [vmem:[#allocation2 + $0x20] sm:$0xff]  ;;  %v566_v34 = vsel %vm290_vm2, %v4852_v22, 0  ;;  %v898_v23 = vsel %vm290_vm2, %v3617_v8, 0 }
  0x8d   :  { %211 = vst.msk [vmem:[#allocation2 + $0xf1] sm:$0xff] %vm156_vm0, %v152_v33  ;;  %v4888_v41 = vld [vmem:[#allocation2 + $0x71] sm:$0xff]  ;;  %v260_v38 = vpack.c.bf16 %v4885_v40, %v248_v32  ;;  %v515_v9 = vld [vmem:[#allocation2 + $0x2] sm:$0xff]  ;;  %v697_v14 = vpack.c.bf16 %v217_v25, %v216_v20 }
  0x8e   :  { %210 = vst.msk [vmem:[#allocation2 + $0xe1] sm:$0xff] %vm156_vm0, %v151_v37  ;;  %v121_v42 = vpop.permute.xlu1 %120  ;;  %v4894_v43 = vpack.c.bf16 %v4888_v41, %v4861_v26  ;;  %v4900_v48 = vld [vmem:[#allocation2 + $0xb2] sm:$0xff]  ;;  %v219_v37 = vld [vmem:[#allocation2 + $0x40] sm:$0xff] }
  0x8f   :  { %v154_v39 = vmax.f32 %v4774_v44, %v121_v42  ;;  %v119_v46 = vpop.permute.xlu0 %118  ;;  %v218_v30 = vld [vmem:[#allocation2 + $0x30] sm:$0xff]  ;;  %v3608_v42 = vld [vmem:[%s5922_s1 + $0x6] sm:$0x3] }
  0x90   :  { %v153_v47 = vmax.f32 %v4778_v45, %v119_v46  ;;  %v4906_v52 = vld [vmem:[#allocation2 + $0xd1] sm:$0xff]  ;;  %v4964_v33 = vpack.c.bf16 %v218_v30, %v217_v25  ;;  %v223_v46 = vld [vmem:[#allocation2 + $0xa0] sm:$0xff]  ;;  %v732_v15 = vsel %vm290_vm2, %v3608_v42, 0 }
  0x91   :  { %3913 = vmatmul.mubr.msk.bf16.gmra.mrb[4].mxu0 %vm156_vm0, %v4894_v43  ;;  %213 = vst.msk [vmem:[#allocation2 + $0x111] sm:$0xff] %vm156_vm0, %v154_v39  ;;  %v4904_v49 = vld [vmem:[#allocation2 + $0xc1] sm:$0xff]  ;;  %v4923_v60 = vld [vmem:[#allocation2 + $0xd2] sm:$0xff] }
  0x92   :  { %3916 = vmatprep.mubr.msk.bf16.mxu0 %vm156_vm0, %v260_v38  ;;  %v4908_v53 = vld [vmem:[#allocation2 + $0xc2] sm:$0xff]  ;;  %212 = vst.msk [vmem:[#allocation2 + $0x101] sm:$0xff] %vm156_vm0, %v153_v47  ;;  %v123_v44 = vpop.permute.xlu1 %122  ;;  %v4919_v58 = vpack.c.bf16 %v4906_v52, %v4904_v49  ;;  %v4962_v32 = vld [vmem:[#allocation2 + $0x50] sm:$0xff] }
  0x93   :  { %v155_v45 = vmax.f32 %v4794_v50, %v123_v44  ;;  %v107_v54 = vpop.permute.xlu0 %106  ;;  %v4969_v38 = vpack.c.bf16 %v4962_v32, %v219_v37  ;;  %v222_v39 = vld [vmem:[#allocation2 + $0x70] sm:$0xff]  ;;  %v221_v47 = vld [vmem:[#allocation2 + $0x60] sm:$0xff] }
  0x94   :  { %v147_v57 = vmax.f32 %v4798_v51, %v107_v54  ;;  %v4921_v59 = vld [vmem:[#allocation2 + $0xf1] sm:$0xff]  ;;  %v4979_v44 = vpack.c.bf16 %v222_v39, %v221_v47  ;;  %v225_v18 = vld [vmem:[#allocation2 + $0xc0] sm:$0xff] }
  0x95   :  { %214 = vst.msk [vmem:[#allocation2 + $0x121] sm:$0xff] %vm156_vm0, %v155_v45  ;;  %v4926_v50 = vld [vmem:[#allocation2 + $0xe1] sm:$0xff]  ;;  %v4941_v0 = vld [vmem:[#allocation2 + $0xf2] sm:$0xff] }
  0x96   :  { %v4928_v61 = vld [vmem:[#allocation2 + $0xe2] sm:$0xff]  ;;  %206 = vst.msk [vmem:[#allocation2 + $0x81] sm:$0xff] %vm156_vm0, %v147_v57  ;;  %v4933_v62 = vpack.c.bf16 %v4921_v59, %v4926_v50  ;;  %v224_v22 = vld [vmem:[#allocation2 + $0xb0] sm:$0xff] }
  0x97   :  { %v235_v45 = vpack.c.bf16 %v224_v22, %v223_v46  ;;  %v226_v54 = vld [vmem:[#allocation2 + $0xd0] sm:$0xff]  ;;  %v5028_v55 = vpack.c.bf16 %v4941_v0, %v4928_v61 }
  0x98   :  { %v4947_v4 = vld [vmem:[#allocation2 + $0x111] sm:$0xff] }
  0x99   :  { %3917 = vmatmul.mubr.msk.bf16.gmra.mrb[8].mxu0 %vm156_vm0, %v4919_v58  ;;  %v4945_v2 = vld [vmem:[#allocation2 + $0x101] sm:$0xff]  ;;  %v228_v57 = vld [vmem:[#allocation2 + $0xf0] sm:$0xff] }
  0x9a   :  { %3920 = vmatprep.mubr.msk.bf16.mxu0 %vm156_vm0, %v4933_v62  ;;  %v4949_v7 = vld [vmem:[#allocation2 + $0x102] sm:$0xff]  ;;  %v4957_v16 = vpack.c.bf16 %v4947_v4, %v4945_v2  ;;  %v230_v46 = vld [vmem:[#allocation2 + $0x110] sm:$0xff] }
  0x9b   :  { %v229_v63 = vld [vmem:[#allocation2 + $0x100] sm:$0xff] }
  0x9c   :  { %v4992_v56 = vpack.c.bf16 %v230_v46, %v229_v63 }
  0x9d   :  { %v688_v20 = vld [vmem:[#allocation2 + $0x80] sm:$0xff] }
  0x9e   :  { %v700_v25 = vpack.c.bf16 %v688_v20, %v222_v39  ;;  %v5944_v39 = vpack.c.bf16 %v4861_v26, %v4866_v28  ;;  %v862_v26 = vld [vmem:[#allocation2 + $0x121] sm:$0xff] }
  0x9f   :  { %v870_v28 = vpack.c.bf16 %v862_v26, %v4947_v4 }
  0xa1   :  { %3921 = vmatmul.mubr.msk.bf16.gmra.mrb[12].mxu0 %vm156_vm0, %v4957_v16 }
  0xa2   :  { %3926 = vmatprep.mubr.msk.bf16.mxu0 %vm156_vm0, %v231_v21  ;;  %v4984_v21 = vpack.c.bf16 %v226_v54, %v225_v18 }
  0xa9   :  { %3927 = vmatmul.mubr.msk.bf16.vlgmr.msra.gmra.mrb[0].mxu0 %vm156_vm0, %v4964_v33 }
  0xaa   :  { %3943 = vmatpush3.bf16.msra.mxu0 %v566_v34  ;;  %3930 = vmatprep.mubr.msk.bf16.mxu0 %vm156_vm0, %v4969_v38  ;;  %v227_v34 = vld [vmem:[#allocation2 + $0xe0] sm:$0xff] }
  0xab   :  { %4489 = vmatprep.subr.msk.bf16.mxu0 %vm290_vm2, %v3608_v42  ;;  %v4986_v3 = vpack.c.bf16 %v228_v57, %v227_v34 }
  0xb1   :  { %3931 = vmatmul.mubr.msk.bf16.gmra.mrb[4].mxu0 %vm156_vm0, %v4979_v44 }
  0xb2   :  { %3934 = vmatprep.mubr.msk.bf16.mxu0 %vm156_vm0, %v235_v45  ;;  %v531_v45 = vpack.c.bf16 %v4846_v19, %v515_v9  ;;  %v522_v9 = vld [vmem:[#allocation2 + $0x72] sm:$0xff] }
  0xb3   :  { %v5016_v42 = vpack.c.bf16 %v522_v9, %v4863_v27 }
  0xb5   :  { %5939 = vst [vmem:[#allocation4_spill] sm:$0xff] %v5016_v42 }
  0xb9   :  { %3935 = vmatmul.mubr.msk.bf16.gmra.mrb[8].mxu0 %vm156_vm0, %v4984_v21 }
  0xba   :  { %3938 = vmatprep.mubr.msk.bf16.mxu0 %vm156_vm0, %v4986_v3 }
  0xc1   :  { %3939 = vmatmul.mubr.msk.bf16.gmra.mrb[12].mxu0 %vm156_vm0, %v4992_v56 }
  0xc2   :  { %3944 = vmatprep.mubr.msk.bf16.mxu0 %vm156_vm0, %v531_v45  ;;  %v523_v45 = vld [vmem:[#allocation2 + $0xa2] sm:$0xff] }
  0xc3   :  { %v535_v51 = vpack.c.bf16 %v4900_v48, %v523_v45  ;;  %v530_v45 = vld [vmem:[#allocation2 + $0x112] sm:$0xff] }
  0xc4   :  { %v5035_v35 = vpack.c.bf16 %v530_v45, %v4949_v7 }
  0xc6   :  { %5941 = vst [vmem:[#allocation6_spill] sm:$0xff] %v5035_v35 }
  0xc9   :  { %3945 = vmatmul.mubr.msk.bf16.vlgmr.msra.gmra.mrb[0].mxu0 %vm156_vm0, %v5000_v36 }
  0xca   :  { %3961 = vmatpush3.bf16.msra.mxu0 %v732_v15  ;;  %3948 = vmatprep.mubr.msk.bf16.mxu0 %vm156_vm0, %v5005_v24  ;;  %v5024_v15 = vpack.c.bf16 %v4923_v60, %v4908_v53 }
  0xcb   :  { %4490 = vmatprep.subr.msk.bf16.mxu0 %vm290_vm2, %v3617_v8  ;;  %v703_v8 = vpack.c.bf16 %v229_v63, %v228_v57  ;;  %v5943_v63 = vpack.c.bf16 %v4826_v10, %v4819_v5  ;;  %v5946_v5 = vpack.c.bf16 %v4926_v50, %v4906_v52  ;;  %v5947_v10 = vpack.c.bf16 %v4945_v2, %v4921_v59 }
  0xcc   :  { %5940 = vst [vmem:[#allocation5_spill] sm:$0xff] %v5024_v15  ;;  %v5949_v52 = vpack.c.bf16 %v4828_v11, %v4821_v6  ;;  %v5950_v59 = vpack.c.bf16 %v4863_v27, %v4868_v29  ;;  %v5951_v50 = vpack.c.bf16 %v4908_v53, %v4900_v48  ;;  %v5952_v6 = vpack.c.bf16 %v4928_v61, %v4923_v60  ;;  %v1028_v27 = vld [vmem:[#allocation2 + $0x122] sm:$0xff]  ;;  %v3653_v53 = vld [vmem:[%s5922_s1 + $0x10] sm:$0x3] }
  0xcd   :  { %v5953_v11 = vpack.c.bf16 %v4949_v7, %v4941_v0  ;;  %v1036_v29 = vpack.c.bf16 %v1028_v27, %v530_v45  ;;  %v1187_v60 = vld [vmem:[#allocation2 + $0x90] sm:$0xff]  ;;  %v1563_v4 = vsel %vm290_vm2, %v3653_v53, 0 }
  0xce   :  { %v1199_v61 = vpack.c.bf16 %v1187_v60, %v688_v20  ;;  %v1195_v0 = vld [vmem:[#allocation2 + $0x130] sm:$0xff] }
  0xd1   :  { %3949 = vmatmul.mubr.msk.bf16.gmra.mrb[4].mxu0 %vm156_vm0, %v5016_v42  ;;  %v699_v42 = vpack.c.bf16 %v221_v47, %v4962_v32 }
  0xd2   :  { %3952 = vmatprep.mubr.msk.bf16.mxu0 %vm156_vm0, %v535_v51  ;;  %v698_v51 = vpack.c.bf16 %v219_v37, %v218_v30  ;;  %v696_v30 = vld [vmem:[#allocation2 + $0x120] sm:$0xff] }
  0xd3   :  { %v704_v32 = vpack.c.bf16 %v696_v30, %v230_v46  ;;  %v1203_v2 = vpack.c.bf16 %v1195_v0, %v696_v30  ;;  %v5270_v30 = vld [vmem:[%s5923_s2] sm:$0xf] }
  0xd9   :  { %3953 = vmatmul.mubr.msk.bf16.gmra.mrb[8].mxu0 %vm156_vm0, %v5024_v15  ;;  %v3626_v15 = vld [vmem:[%s5922_s1 + $0xa] sm:$0x3] }
  0xda   :  { %3956 = vmatprep.mubr.msk.bf16.mxu0 %vm156_vm0, %v5028_v55  ;;  %v1064_v37 = vsel %vm290_vm2, %v3626_v15, 0 }
  0xe1   :  { %3957 = vmatmul.mubr.msk.bf16.gmra.mrb[12].mxu0 %vm156_vm0, %v5035_v35  ;;  %v701_v35 = vpack.c.bf16 %v225_v18, %v224_v22  ;;  %v5945_v22 = vpack.c.bf16 %v4904_v49, %v4885_v40  ;;  %v5948_v40 = vpack.c.bf16 %v4833_v13, %v4846_v19  ;;  %v3644_v49 = vld [vmem:[%s5922_s1 + $0xe] sm:$0x3]  ;;  %v1020_v13 = vld [vmem:[#allocation2 + $0x82] sm:$0xff] }
  0xe2   :  { %3962 = vmatprep.mubr.msk.bf16.mxu0 %vm156_vm0, %v697_v14  ;;  %v702_v14 = vpack.c.bf16 %v227_v34, %v226_v54  ;;  %v1032_v19 = vpack.c.bf16 %v1020_v13, %v522_v9  ;;  %v1397_v48 = vsel %vm290_vm2, %v3644_v49, 0 }
  0xe9   :  { %3963 = vmatmul.mubr.msk.bf16.vlgmr.msra.gmra.mrb[0].mxu0 %vm156_vm0, %v698_v51 }
  0xea   :  { %3979 = vmatpush3.bf16.msra.mxu0 %v898_v23  ;;  %3966 = vmatprep.mubr.msk.bf16.mxu0 %vm156_vm0, %v699_v42  ;;  %v5942_v23 = vpack.c.bf16 %v4831_v12, %v4815_v1  ;;  %v854_v1 = vld [vmem:[#allocation2 + $0x81] sm:$0xff] }
  0xeb   :  { %4491 = vmatprep.subr.msk.bf16.mxu0 %vm290_vm2, %v3626_v15  ;;  %v866_v12 = vpack.c.bf16 %v854_v1, %v4888_v41 }
  0xf1   :  { %3967 = vmatmul.mubr.msk.bf16.gmra.mrb[4].mxu0 %vm156_vm0, %v700_v25 }
  0xf2   :  { %3970 = vmatprep.mubr.msk.bf16.mxu0 %vm156_vm0, %v701_v35  ;;  %v3635_v35 = vld [vmem:[%s5922_s1 + $0xc] sm:$0x3] }
  0xf3   :  { %v1231_v41 = vsel %vm290_vm2, %v3635_v35, 0 }
  0xf9   :  { %3971 = vmatmul.mubr.msk.bf16.gmra.mrb[8].mxu0 %vm156_vm0, %v702_v14 }
  0xfa   :  { %3974 = vmatprep.mubr.msk.bf16.mxu0 %vm156_vm0, %v703_v8 }
 0x101   :  { %3975 = vmatmul.mubr.msk.bf16.gmra.mrb[12].mxu0 %vm156_vm0, %v704_v32 }
 0x102   :  { %3980 = vmatprep.mubr.msk.bf16.mxu0 %vm156_vm0, %v5942_v23 }
 0x109   :  { %3981 = vmatmul.mubr.msk.bf16.vlgmr.msra.gmra.mrb[0].mxu0 %vm156_vm0, %v5943_v63 }
 0x10a   :  { %3997 = vmatpush3.bf16.msra.mxu0 %v1064_v37  ;;  %3984 = vmatprep.mubr.msk.bf16.mxu0 %vm156_vm0, %v5944_v39 }
 0x10b   :  { %4492 = vmatprep.subr.msk.bf16.mxu0 %vm290_vm2, %v3635_v35 }
 0x111   :  { %3985 = vmatmul.mubr.msk.bf16.gmra.mrb[4].mxu0 %vm156_vm0, %v866_v12 }
 0x112   :  { %3988 = vmatprep.mubr.msk.bf16.mxu0 %vm156_vm0, %v5945_v22 }
 0x119   :  { %3989 = vmatmul.mubr.msk.bf16.gmra.mrb[8].mxu0 %vm156_vm0, %v5946_v5 }
 0x11a   :  { %3992 = vmatprep.mubr.msk.bf16.mxu0 %vm156_vm0, %v5947_v10 }
 0x121   :  { %3993 = vmatmul.mubr.msk.bf16.gmra.mrb[12].mxu0 %vm156_vm0, %v870_v28 }
 0x122   :  { %3998 = vmatprep.mubr.msk.bf16.mxu0 %vm156_vm0, %v5948_v40 }
 0x129   :  { %3999 = vmatmul.mubr.msk.bf16.vlgmr.msra.gmra.mrb[0].mxu0 %vm156_vm0, %v5949_v52 }
 0x12a   :  { %4015 = vmatpush3.bf16.msra.mxu0 %v1231_v41  ;;  %4002 = vmatprep.mubr.msk.bf16.mxu0 %vm156_vm0, %v5950_v59 }
 0x12b   :  { %4493 = vmatprep.subr.msk.bf16.mxu0 %vm290_vm2, %v3644_v49 }
 0x131   :  { %4003 = vmatmul.mubr.msk.bf16.gmra.mrb[4].mxu0 %vm156_vm0, %v1032_v19 }
 0x132   :  { %4006 = vmatprep.mubr.msk.bf16.mxu0 %vm156_vm0, %v5951_v50 }
 0x139   :  { %4007 = vmatmul.mubr.msk.bf16.gmra.mrb[8].mxu0 %vm156_vm0, %v5952_v6 }
 0x13a   :  { %4010 = vmatprep.mubr.msk.bf16.mxu0 %vm156_vm0, %v5953_v11 }
 0x141   :  { %4011 = vmatmul.mubr.msk.bf16.gmra.mrb[12].mxu0 %vm156_vm0, %v1036_v29 }
 0x142   :  { %4016 = vmatprep.mubr.msk.bf16.mxu0 %vm156_vm0, %v4964_v33 }
 0x149   :  { %4017 = vmatmul.mubr.msk.bf16.vlgmr.msra.gmra.mrb[0].mxu0 %vm156_vm0, %v4969_v38 }
 0x14a   :  { %4033 = vmatpush3.bf16.msra.mxu0 %v1397_v48  ;;  %4020 = vmatprep.mubr.msk.bf16.mxu0 %vm156_vm0, %v4979_v44 }
 0x14b   :  { %4494 = vmatprep.subr.msk.bf16.mxu0 %vm290_vm2, %v3653_v53 }
 0x151   :  { %4021 = vmatmul.mubr.msk.bf16.gmra.mrb[4].mxu0 %vm156_vm0, %v1199_v61 }
 0x152   :  { %4024 = vmatprep.mubr.msk.bf16.mxu0 %vm156_vm0, %v4984_v21  ;;  %v3663_v21 = vld [vmem:[%s5923_s2 + $0x4] sm:$0xf] }
 0x153   :  { %4495 = vmatprep.subr.msk.bf16.mxu1 %vm1985_vm5, %v3663_v21  ;;  %v1987_v46 = vsel %vm1985_vm5, %v3663_v21, 0 }
 0x154   :  { %4069 = vmatpush3.bf16.msra.mxu1 %v1987_v46 }
 0x155   :  { %4496 = vmatprep.subr.msk.bf16.mxu1 %vm1985_vm5, %v5270_v30 }
 0x159   :  { %4025 = vmatmul.mubr.msk.bf16.gmra.mrb[8].mxu0 %vm156_vm0, %v4986_v3  ;;  %v1353_v3 = vld [vmem:[#allocation2 + $0x91] sm:$0xff] }
 0x15a   :  { %4028 = vmatprep.mubr.msk.bf16.mxu0 %vm156_vm0, %v4992_v56  ;;  %v1365_v7 = vpack.c.bf16 %v1353_v3, %v854_v1 }
 0x161   :  { %4029 = vmatmul.mubr.msk.bf16.gmra.mrb[12].mxu0 %vm156_vm0, %v1203_v2 }
 0x162   :  { %4034 = vmatprep.mubr.msk.bf16.mxu0 %vm156_vm0, %v4842_v17  ;;  %v1361_v17 = vld [vmem:[#allocation2 + $0x131] sm:$0xff] }
 0x163   :  { %v1369_v56 = vpack.c.bf16 %v1361_v17, %v862_v26 }
 0x169   :  { %4035 = vmatmul.mubr.msk.bf16.vlgmr.msra.gmra.mrb[0].mxu0 %vm156_vm0, %v4873_v31  ;;  %v5954_v31 = vld [vmem:[#allocation4_spill] sm:$0xff] }
 0x16a   :  { %4051 = vmatpush3.bf16.msra.mxu0 %v1563_v4  ;;  %4038 = vmatprep.mubr.msk.bf16.mxu0 %vm156_vm0, %v4894_v43  ;;  %v1519_v43 = vld [vmem:[#allocation2 + $0x92] sm:$0xff] }
 0x171   :  { %4039 = vmatmul.mubr.msk.bf16.gmra.mrb[4].mxu0 %vm156_vm0, %v1365_v7 }
 0x172   :  { %4042 = vmatprep.mubr.msk.bf16.mxu0 %vm156_vm0, %v4919_v58  ;;  %v1531_v58 = vpack.c.bf16 %v1519_v43, %v1020_v13 }
 0x179   :  { %4043 = vmatmul.mubr.msk.bf16.gmra.mrb[8].mxu0 %vm156_vm0, %v4933_v62  ;;  %v5955_v62 = vld [vmem:[#allocation5_spill] sm:$0xff] }
 0x17a   :  { %4046 = vmatprep.mubr.msk.bf16.mxu0 %vm156_vm0, %v4957_v16  ;;  %v5956_v16 = vld [vmem:[#allocation6_spill] sm:$0xff] }
 0x181   :  { %4047 = vmatmul.mubr.msk.bf16.gmra.mrb[12].mxu0 %vm156_vm0, %v1369_v56 }
 0x182   :  { %4052 = vmatprep.mubr.msk.bf16.mxu0 %vm156_vm0, %v5000_v36  ;;  %v1527_v36 = vld [vmem:[#allocation2 + $0x132] sm:$0xff] }
 0x183   :  { %v1535_v33 = vpack.c.bf16 %v1527_v36, %v1028_v27 }
 0x189   :  { %4053 = vmatmul.mubr.msk.bf16.vlgmr.msra.gmra.mrb[0].mxu0 %vm156_vm0, %v5005_v24  ;;  %v5957_v24 = vmov 0.0  }
 0x18a   :  { %4056 = vmatprep.mubr.msk.bf16.mxu0 %vm156_vm0, %v5954_v31  ;;  %1852 = vst.msk [vmem:[#allocation3] sm:$0xff] %vm1680_vm3, %v5957_v24  ;;  %1855 = vst.msk [vmem:[#allocation3 + $0x10] sm:$0xff] %vm1680_vm3, %v5957_v24 }
 0x18b   :  { %1857 = vst.msk [vmem:[#allocation3 + $0x20] sm:$0xff] %vm1680_vm3, %v5957_v24  ;;  %1859 = vst.msk [vmem:[#allocation3 + $0x30] sm:$0xff] %vm1680_vm3, %v5957_v24 }
 0x18c   :  { %1861 = vst.msk [vmem:[#allocation3 + $0x40] sm:$0xff] %vm1680_vm3, %v5957_v24  ;;  %1863 = vst.msk [vmem:[#allocation3 + $0x50] sm:$0xff] %vm1680_vm3, %v5957_v24 }
 0x18d   :  { %1865 = vst.msk [vmem:[#allocation3 + $0x60] sm:$0xff] %vm1680_vm3, %v5957_v24  ;;  %1867 = vst.msk [vmem:[#allocation3 + $0x70] sm:$0xff] %vm1680_vm3, %v5957_v24 }
 0x18e   :  { %1869 = vst.msk [vmem:[#allocation3 + $0x80] sm:$0xff] %vm1680_vm3, %v5957_v24  ;;  %1871 = vst.msk [vmem:[#allocation3 + $0x90] sm:$0xff] %vm1680_vm3, %v5957_v24 }
 0x18f   :  { %1873 = vst.msk [vmem:[#allocation3 + $0xa0] sm:$0xff] %vm1680_vm3, %v5957_v24  ;;  %1875 = vst.msk [vmem:[#allocation3 + $0xb0] sm:$0xff] %vm1680_vm3, %v5957_v24 }
 0x190   :  { %1877 = vst.msk [vmem:[#allocation3 + $0xc0] sm:$0xff] %vm1680_vm3, %v5957_v24  ;;  %1879 = vst.msk [vmem:[#allocation3 + $0xd0] sm:$0xff] %vm1680_vm3, %v5957_v24 }
 0x191   :  { %4057 = vmatmul.mubr.msk.bf16.gmra.mrb[4].mxu0 %vm156_vm0, %v1531_v58  ;;  %1881 = vst.msk [vmem:[#allocation3 + $0xe0] sm:$0xff] %vm1680_vm3, %v5957_v24  ;;  %1883 = vst.msk [vmem:[#allocation3 + $0xf0] sm:$0xff] %vm1680_vm3, %v5957_v24 }
 0x192   :  { %4060 = vmatprep.mubr.msk.bf16.mxu0 %vm156_vm0, %v5955_v62  ;;  %1885 = vst.msk [vmem:[#allocation3 + $0x100] sm:$0xff] %vm1680_vm3, %v5957_v24  ;;  %1887 = vst.msk [vmem:[#allocation3 + $0x110] sm:$0xff] %vm1680_vm3, %v5957_v24 }
 0x193   :  { %1889 = vst.msk [vmem:[#allocation3 + $0x120] sm:$0xff] %vm1680_vm3, %v5957_v24  ;;  %1891 = vst.msk [vmem:[#allocation3 + $0x130] sm:$0xff] %vm1680_vm3, %v5957_v24 }
 0x194   :  { %1866 = vst.msk [vmem:[#allocation3 + $0x68] sm:$0x3] %vm1853_vm4, %v5957_v24  ;;  %1868 = vst.msk [vmem:[#allocation3 + $0x78] sm:$0x3] %vm1853_vm4, %v5957_v24 }
 0x195   :  { %1870 = vst.msk [vmem:[#allocation3 + $0x88] sm:$0x3] %vm1853_vm4, %v5957_v24  ;;  %1876 = vst.msk [vmem:[#allocation3 + $0xb8] sm:$0x3] %vm1853_vm4, %v5957_v24 }
 0x196   :  { %1878 = vst.msk [vmem:[#allocation3 + $0xc8] sm:$0x3] %vm1853_vm4, %v5957_v24  ;;  %1880 = vst.msk [vmem:[#allocation3 + $0xd8] sm:$0x3] %vm1853_vm4, %v5957_v24 }
 0x197   :  { %1882 = vst.msk [vmem:[#allocation3 + $0xe8] sm:$0x3] %vm1853_vm4, %v5957_v24  ;;  %1884 = vst.msk [vmem:[#allocation3 + $0xf8] sm:$0x3] %vm1853_vm4, %v5957_v24 }
 0x198   :  { %1886 = vst.msk [vmem:[#allocation3 + $0x108] sm:$0x3] %vm1853_vm4, %v5957_v24  ;;  %1888 = vst.msk [vmem:[#allocation3 + $0x118] sm:$0x3] %vm1853_vm4, %v5957_v24 }
 0x199   :  { %4061 = vmatmul.mubr.msk.bf16.gmra.mrb[8].mxu0 %vm156_vm0, %v5028_v55  ;;  %1890 = vst.msk [vmem:[#allocation3 + $0x128] sm:$0x3] %vm1853_vm4, %v5957_v24  ;;  %1854 = vst.msk [vmem:[#allocation3 + $0x8] sm:$0x3] %vm1853_vm4, %v5957_v24 }
 0x19a   :  { %4064 = vmatprep.mubr.msk.bf16.mxu0 %vm156_vm0, %v5956_v16  ;;  %1856 = vst.msk [vmem:[#allocation3 + $0x18] sm:$0x3] %vm1853_vm4, %v5957_v24  ;;  %1858 = vst.msk [vmem:[#allocation3 + $0x28] sm:$0x3] %vm1853_vm4, %v5957_v24 }
 0x19b   :  { %1860 = vst.msk [vmem:[#allocation3 + $0x38] sm:$0x3] %vm1853_vm4, %v5957_v24  ;;  %1862 = vst.msk [vmem:[#allocation3 + $0x48] sm:$0x3] %vm1853_vm4, %v5957_v24 }
 0x19c   :  { %1864 = vst.msk [vmem:[#allocation3 + $0x58] sm:$0x3] %vm1853_vm4, %v5957_v24  ;;  %1872 = vst.msk [vmem:[#allocation3 + $0x98] sm:$0x3] %vm1853_vm4, %v5957_v24 }
 0x19d   :  { %1874 = vst.msk [vmem:[#allocation3 + $0xa8] sm:$0x3] %vm1853_vm4, %v5957_v24  ;;  %1892 = vst.msk [vmem:[#allocation3 + $0x138] sm:$0x3] %vm1853_vm4, %v5957_v24 }
 0x1a1   :  { %4065 = vmatmul.mubr.msk.bf16.gmra.mrb[12].mxu0 %vm156_vm0, %v1535_v33 }
 0x25c   :  { %v5205_v55 = vpop.f32.mrb[0].mxu0 }
 0x25d   :  { %v5207_v38 = vpop.f32.mrb[1].mxu0  ;;  %v1684_v34 = vsel %vm1680_vm3, %v5205_v55, 0.0 }
 0x25e   :  { %v5209_v47 = vpop.f32.mrb[2].mxu0  ;;  %v1681_v54 = vsel %vm1680_vm3, %v5207_v38, 0.0 }
 0x25f   :  { %v5211_v44 = vpop.f32.mrb[3].mxu0  ;;  %v1686_v42 = vsel %vm1680_vm3, %v5209_v47, 0.0 }
 0x260   :  { %v1682_v57 = vsel %vm1680_vm3, %v5211_v44, 0.0 }
 0x261   :  { %v1683_v18 = vadd.f32 %v1682_v57, %v1681_v54 }
 0x263   :  { %v1685_v9 = vadd.f32 %v1684_v34, %v1683_v18 }
 0x264   :  { %v4058_v15 = vpop.f32.mrb[4].mxu0 }
 0x265   :  { %v1615_v45 = vpop.f32.mrb[5].mxu0  ;;  %v1687_v51 = vadd.f32 %v1686_v42, %v1685_v9  ;;  %v1692_v37 = vsel %vm1680_vm3, %v4058_v15, 0.0 }
 0x266   :  { %v1688_v20 = vsel %vm1680_vm3, %v1615_v45, 0.0  ;;  %v4059_v25 = vpop.f32.mrb[6].mxu0 }
 0x267   :  { %v1689_v14 = vadd.f32 %v1688_v20, %v1687_v51  ;;  %v1618_v8 = vpop.f32.mrb[7].mxu0  ;;  %v1694_v63 = vsel %vm1680_vm3, %v4059_v25, 0.0 }
 0x268   :  { %v1690_v32 = vsel %vm1680_vm3, %v1618_v8, 0.0 }
 0x269   :  { %v1691_v23 = vadd.f32 %v1690_v32, %v1689_v14 }
 0x26b   :  { %v1693_v35 = vadd.f32 %v1692_v37, %v1691_v23 }
 0x26c   :  { %v4062_v39 = vpop.f32.mrb[8].mxu0 }
 0x26d   :  { %v1631_v1 = vpop.f32.mrb[9].mxu0  ;;  %v1695_v12 = vadd.f32 %v1694_v63, %v1693_v35  ;;  %v1700_v41 = vsel %vm1680_vm3, %v4062_v39, 0.0 }
 0x26e   :  { %v1696_v22 = vsel %vm1680_vm3, %v1631_v1, 0.0  ;;  %v4063_v5 = vpop.f32.mrb[10].mxu0 }
 0x26f   :  { %v1697_v10 = vadd.f32 %v1696_v22, %v1695_v12  ;;  %v1634_v26 = vpop.f32.mrb[11].mxu0  ;;  %v1702_v52 = vsel %vm1680_vm3, %v4063_v5, 0.0 }
 0x270   :  { %v1698_v28 = vsel %vm1680_vm3, %v1634_v26, 0.0 }
 0x271   :  { %v1699_v40 = vadd.f32 %v1698_v28, %v1697_v10 }
 0x273   :  { %v1701_v49 = vadd.f32 %v1700_v41, %v1699_v40 }
 0x274   :  { %v4066_v59 = vpop.f32.mrb[12].mxu0 }
 0x275   :  { %v1647_v13 = vpop.f32.mrb[13].mxu0  ;;  %v1703_v19 = vadd.f32 %v1702_v52, %v1701_v49  ;;  %v1708_v53 = vsel %vm1680_vm3, %v4066_v59, 0.0 }
 0x276   :  { %v1704_v50 = vsel %vm1680_vm3, %v1647_v13, 0.0  ;;  %v4067_v6 = vpop.f32.mrb[14].mxu0 }
 0x277   :  { %v1705_v11 = vadd.f32 %v1704_v50, %v1703_v19  ;;  %v1650_v27 = vpop.f32.mrb[15].mxu0  ;;  %v1710_v61 = vsel %vm1680_vm3, %v4067_v6, 0.0 }
 0x278   :  { %v1706_v29 = vsel %vm1680_vm3, %v1650_v27, 0.0 }
 0x279   :  { %v1707_v48 = vadd.f32 %v1706_v29, %v1705_v11 }
 0x27b   :  { %v1709_v60 = vadd.f32 %v1708_v53, %v1707_v48 }
 0x27d   :  { %v1711_v0 = vadd.f32 %v1710_v61, %v1709_v60 }
 0x27f   :  { %v1712_v2 = vrot.slane %v1711_v0, 4 }
 0x281   :  { %v1713_v4 = vadd.f32 %v1712_v2, %v1711_v0 }
 0x283   :  { %v1714_v3 = vrot.slane %v1713_v4, 2 }
 0x285   :  { %v1715_v7 = vadd.f32 %v1714_v3, %v1713_v4 }
 0x287   :  { %v1716_v17 = vrot.slane %v1715_v7, 1 }
 0x289   :  { %v1717_v56 = vadd.f32 %v1716_v17, %v1715_v7 }
 0x28b   :  { %v1718_v31 = vmul.f32 0.0078125, %v1717_v56 }
 0x28d   :  { %v5286_v43 = vsub.f32 %v5207_v38, %v1718_v31  ;;  %v5289_v58 = vsub.f32 %v5211_v44, %v1718_v31  ;;  %v5292_v62 = vsub.f32 %v5205_v55, %v1718_v31  ;;  %v5295_v16 = vsub.f32 %v5209_v47, %v1718_v31 }
 0x28e   :  { %v5297_v36 = vsub.f32 %v1615_v45, %v1718_v31  ;;  %v5299_v33 = vsub.f32 %v1618_v8, %v1718_v31  ;;  %v5301_v24 = vsub.f32 %v4058_v15, %v1718_v31  ;;  %v5303_v54 = vsub.f32 %v4059_v25, %v1718_v31 }
 0x28f   :  { %v5305_v57 = vsub.f32 %v1631_v1, %v1718_v31  ;;  %v5307_v38 = vsub.f32 %v1634_v26, %v1718_v31  ;;  %v5309_v44 = vsub.f32 %v4062_v39, %v1718_v31  ;;  %v5311_v18 = vsub.f32 %v4063_v5, %v1718_v31 }
 0x290   :  { %v5313_v55 = vsub.f32 %v1647_v13, %v1718_v31  ;;  %v5315_v47 = vsub.f32 %v1650_v27, %v1718_v31  ;;  %v5317_v21 = vsub.f32 %v4066_v59, %v1718_v31  ;;  %v5319_v34 = vsub.f32 %v4067_v6, %v1718_v31 }
 0x291   :  { %v1735_v46 = vmul.f32 %v5286_v43, %v5286_v43  ;;  %v1736_v9 = vmul.f32 %v5289_v58, %v5289_v58  ;;  %v1737_v42 = vmul.f32 %v5292_v62, %v5292_v62  ;;  %v1738_v15 = vmul.f32 %v5295_v16, %v5295_v16 }
 0x292   :  { %v1739_v25 = vmul.f32 %v5297_v36, %v5297_v36  ;;  %v1740_v32 = vmul.f32 %v5299_v33, %v5299_v33  ;;  %v1741_v35 = vmul.f32 %v5301_v24, %v5301_v24  ;;  %v1742_v1 = vmul.f32 %v5303_v54, %v5303_v54 }
 0x293   :  { %v1751_v45 = vsel %vm1680_vm3, %v1735_v46, 0.0  ;;  %v1752_v51 = vsel %vm1680_vm3, %v1736_v9, 0.0  ;;  %v1754_v14 = vsel %vm1680_vm3, %v1737_v42, 0.0  ;;  %v1756_v23 = vsel %vm1680_vm3, %v1738_v15, 0.0 }
 0x294   :  { %v1753_v20 = vadd.f32 %v1752_v51, %v1751_v45  ;;  %v1758_v63 = vsel %vm1680_vm3, %v1739_v25, 0.0  ;;  %v1760_v12 = vsel %vm1680_vm3, %v1740_v32, 0.0  ;;  %v1743_v5 = vmul.f32 %v5305_v57, %v5305_v57  ;;  %v1678_v32 = vld [vmem:[%s5924_s3] sm:$0x1] }
 0x295   :  { %v1762_v10 = vsel %vm1680_vm3, %v1741_v35, 0.0  ;;  %v1744_v28 = vmul.f32 %v5307_v38, %v5307_v38  ;;  %v1764_v40 = vsel %vm1680_vm3, %v1742_v1, 0.0  ;;  %v1745_v49 = vmul.f32 %v5309_v44, %v5309_v44 }
 0x296   :  { %v1755_v8 = vadd.f32 %v1754_v14, %v1753_v20  ;;  %v1766_v52 = vsel %vm1680_vm3, %v1743_v5, 0.0  ;;  %v1746_v13 = vmul.f32 %v5311_v18, %v5311_v18  ;;  %v1747_v6 = vmul.f32 %v5313_v55, %v5313_v55  ;;  %v3662_v5 = vld [vmem:[%s5925_s4] ss:$0 sm:$0xff] }
 0x297   :  { %v1768_v19 = vsel %vm1680_vm3, %v1744_v28, 0.0  ;;  %v1770_v11 = vsel %vm1680_vm3, %v1745_v49, 0.0  ;;  %v1748_v29 = vmul.f32 %v5315_v47, %v5315_v47  ;;  %v1749_v60 = vmul.f32 %v5317_v21, %v5317_v21 }
 0x298   :  { %v1757_v37 = vadd.f32 %v1756_v23, %v1755_v8  ;;  %v1772_v48 = vsel %vm1680_vm3, %v1746_v13, 0.0  ;;  %v1774_v61 = vsel %vm1680_vm3, %v1747_v6, 0.0  ;;  %v1750_v2 = vmul.f32 %v5319_v34, %v5319_v34 }
 0x299   :  { %v1776_v4 = vsel %vm1680_vm3, %v1748_v29, 0.0  ;;  %v1778_v7 = vsel %vm1680_vm3, %v1749_v60, 0.0  ;;  %v1793_v14 = vlaneseq }
 0x29a   :  { %v1759_v39 = vadd.f32 %v1758_v63, %v1757_v37  ;;  %v1780_v56 = vsel %vm1680_vm3, %v1750_v2, 0.0 }
 0x29b   :  { %v5369_v8 = vshrl.u32 %v1793_v14, 7 }
 0x29c   :  { %v1761_v22 = vadd.f32 %v1760_v12, %v1759_v39 }
 0x29d   :  { %5958 = vst [vmem:[#allocation4_spill] sm:$0xff] %v5369_v8  ;;  %v5934_v23 = vsub.s32 0, %v5369_v8 }
 0x29e   :  { %v1763_v26 = vadd.f32 %v1762_v10, %v1761_v22 }
 0x2a0   :  { %v1765_v41 = vadd.f32 %v1764_v40, %v1763_v26 }
 0x2a2   :  { %v1767_v59 = vadd.f32 %v1766_v52, %v1765_v41 }
 0x2a4   :  { %v1769_v50 = vadd.f32 %v1768_v19, %v1767_v59 }
 0x2a6   :  { %v1771_v27 = vadd.f32 %v1770_v11, %v1769_v50 }
 0x2a8   :  { %v1773_v53 = vadd.f32 %v1772_v48, %v1771_v27 }
 0x2aa   :  { %v1775_v0 = vadd.f32 %v1774_v61, %v1773_v53 }
 0x2ac   :  { %v1777_v3 = vadd.f32 %v1776_v4, %v1775_v0 }
 0x2ae   :  { %v1779_v17 = vadd.f32 %v1778_v7, %v1777_v3 }
 0x2b0   :  { %v1781_v31 = vadd.f32 %v1780_v56, %v1779_v17 }
 0x2b2   :  { %v1782_v46 = vrot.slane %v1781_v31, 4 }
 0x2b4   :  { %v1783_v9 = vadd.f32 %v1782_v46, %v1781_v31 }
 0x2b6   :  { %v1784_v42 = vrot.slane %v1783_v9, 2 }
 0x2b8   :  { %v1785_v15 = vadd.f32 %v1784_v42, %v1783_v9  ;;  %v1935_v9 = vld [vmem:[#allocation3 + $0x1] sm:$0xff] }
 0x2ba   :  { %v1786_v45 = vrot.slane %v1785_v15, 1 }
 0x2bc   :  { %v1787_v51 = vadd.f32 %v1786_v45, %v1785_v15 }
 0x2be   :  { %v1788_v20 = vmul.f32 0.0078125, %v1787_v51 }
 0x2c0   :  { %v1789_v25 = vadd.f32 1e-05, %v1788_v20 }
 0x2c2   :  { %4506 = vrsqrt.f32 %v1789_v25 }
 0x2cc   :  { %v4507_v37 = vpop.eup %4506 }
 0x2cd   :  { %v1791_v35 = vmul.f32 %v4507_v37, %v1678_v32 }
 0x2cf   :  { %v1796_v63 = vrot.slane %v1791_v35, %v5934_v23  ;;  %v2111_v35 = vsel %vm1985_vm5, %v5270_v30, 0 }
 0x2d1   :  { %v1798_v39 = vmul.f32 %v1796_v63, %v5286_v43  ;;  %v1799_v1 = vmul.f32 %v1796_v63, %v5289_v58  ;;  %v1800_v12 = vmul.f32 %v1796_v63, %v5292_v62  ;;  %v1801_v22 = vmul.f32 %v1796_v63, %v5295_v16 }
 0x2d2   :  { %v1802_v10 = vmul.f32 %v1796_v63, %v5297_v36  ;;  %v1803_v26 = vmul.f32 %v1796_v63, %v5299_v33  ;;  %v1804_v28 = vmul.f32 %v1796_v63, %v5301_v24  ;;  %v1805_v40 = vmul.f32 %v1796_v63, %v5303_v54 }
 0x2d3   :  { %v1806_v43 = vmul.f32 %v1796_v63, %v5305_v57  ;;  %v1807_v58 = vmul.f32 %v1796_v63, %v5307_v38  ;;  %v1808_v62 = vmul.f32 %v1796_v63, %v5309_v44  ;;  %v1809_v16 = vmul.f32 %v1796_v63, %v5311_v18 }
 0x2d4   :  { %v1810_v41 = vmul.f32 %v1796_v63, %v5313_v55  ;;  %v1811_v49 = vmul.f32 %v1796_v63, %v5315_v47  ;;  %v1812_v36 = vmul.f32 %v1796_v63, %v5317_v21  ;;  %v1813_v33 = vmul.f32 %v1796_v63, %v5319_v34 }
 0x2d5   :  { %v1820_v52 = vadd.f32 %v3662_v5, %v1798_v39  ;;  %v1821_v24 = vadd.f32 %v3662_v5, %v1799_v1  ;;  %v1822_v59 = vadd.f32 %v3662_v5, %v1800_v12  ;;  %v1823_v54 = vadd.f32 %v3662_v5, %v1801_v22  ;;  %v3680_v1 = vld [vmem:[%s5923_s2 + $0x8] sm:$0xf] }
 0x2d6   :  { %v1824_v13 = vadd.f32 %v3662_v5, %v1802_v10  ;;  %v1825_v57 = vadd.f32 %v3662_v5, %v1803_v26  ;;  %v1826_v19 = vadd.f32 %v3662_v5, %v1804_v28  ;;  %v1827_v38 = vadd.f32 %v3662_v5, %v1805_v40 }
 0x2d7   :  { %v1828_v50 = vadd.f32 %v3662_v5, %v1806_v43  ;;  %v1829_v44 = vadd.f32 %v3662_v5, %v1807_v58  ;;  %v1830_v6 = vadd.f32 %v3662_v5, %v1808_v62  ;;  %v1831_v18 = vadd.f32 %v3662_v5, %v1809_v16  ;;  %v1943_v16 = vld [vmem:[#allocation3 + $0xa1] sm:$0xff]  ;;  %v3698_v43 = vld [vmem:[%s5923_s2 + $0x10] sm:$0xf] }
 0x2d8   :  { %v1832_v11 = vadd.f32 %v3662_v5, %v1810_v41  ;;  %v1833_v55 = vadd.f32 %v3662_v5, %v1811_v49  ;;  %v1834_v27 = vadd.f32 %v3662_v5, %v1812_v36  ;;  %v1835_v47 = vadd.f32 %v3662_v5, %v1813_v33 }
 0x2d9   :  { %v1836_v29 = vmax.f32 %v1820_v52, 0.0  ;;  %v1837_v21 = vmax.f32 %v1821_v24, 0.0  ;;  %v1838_v48 = vmax.f32 %v1822_v59, 0.0  ;;  %v1839_v34 = vmax.f32 %v1823_v54, 0.0 }
 0x2da   :  { %v1840_v53 = vmax.f32 %v1824_v13, 0.0  ;;  %v1841_v60 = vmax.f32 %v1825_v57, 0.0  ;;  %v1842_v61 = vmax.f32 %v1826_v19, 0.0  ;;  %v1843_v0 = vmax.f32 %v1827_v38, 0.0 }
 0x2db   :  { %v1844_v2 = vmax.f32 %v1828_v50, 0.0  ;;  %v1845_v4 = vmax.f32 %v1829_v44, 0.0  ;;  %v1846_v3 = vmax.f32 %v1830_v6, 0.0  ;;  %v1847_v7 = vmax.f32 %v1831_v18, 0.0  ;;  %1894 = vst.msk [vmem:[#allocation3 + $0x11] sm:$0xff] %vm1680_vm3, %v1836_v29  ;;  %1895 = vst.msk [vmem:[#allocation3 + $0x21] sm:$0xff] %vm1680_vm3, %v1837_v21 }
 0x2dc   :  { %1896 = vst.msk [vmem:[#allocation3 + $0x31] sm:$0xff] %vm1680_vm3, %v1838_v48  ;;  %1897 = vst.msk [vmem:[#allocation3 + $0x41] sm:$0xff] %vm1680_vm3, %v1839_v34  ;;  %v1848_v17 = vmax.f32 %v1832_v11, 0.0  ;;  %v1849_v56 = vmax.f32 %v1833_v55, 0.0  ;;  %v1850_v31 = vmax.f32 %v1834_v27, 0.0  ;;  %v1851_v46 = vmax.f32 %v1835_v47, 0.0 }
 0x2dd   :  { %1899 = vst.msk [vmem:[#allocation3 + $0x61] sm:$0xff] %vm1680_vm3, %v1841_v60  ;;  %1900 = vst.msk [vmem:[#allocation3 + $0x71] sm:$0xff] %vm1680_vm3, %v1842_v61  ;;  %v1910_v34 = vld [vmem:[#allocation3] sm:$0xff]  ;;  %v2593_v8 = vsel %vm1985_vm5, %v3698_v43, 0 }
 0x2de   :  { %1901 = vst.msk [vmem:[#allocation3 + $0x81] sm:$0xff] %vm1680_vm3, %v1843_v0  ;;  %1898 = vst.msk [vmem:[#allocation3 + $0x51] sm:$0xff] %vm1680_vm3, %v1840_v53  ;;  %v2210_v55 = vld [vmem:[#allocation3 + $0x2] sm:$0xff] }
 0x2df   :  { %1902 = vst.msk [vmem:[#allocation3 + $0xb1] sm:$0xff] %vm1680_vm3, %v1844_v2  ;;  %1903 = vst.msk [vmem:[#allocation3 + $0xc1] sm:$0xff] %vm1680_vm3, %v1845_v4 }
 0x2e0   :  { %1904 = vst.msk [vmem:[#allocation3 + $0xd1] sm:$0xff] %vm1680_vm3, %v1846_v3  ;;  %1905 = vst.msk [vmem:[#allocation3 + $0xe1] sm:$0xff] %vm1680_vm3, %v1847_v7 }
 0x2e1   :  { %1906 = vst.msk [vmem:[#allocation3 + $0xf1] sm:$0xff] %vm1680_vm3, %v1848_v17  ;;  %1907 = vst.msk [vmem:[#allocation3 + $0x101] sm:$0xff] %vm1680_vm3, %v1849_v56  ;;  %v2261_v17 = vsel %vm1985_vm5, %v3680_v1, 0 }
 0x2e2   :  { %1908 = vst.msk [vmem:[#allocation3 + $0x111] sm:$0xff] %vm1680_vm3, %v1850_v31  ;;  %1909 = vst.msk [vmem:[#allocation3 + $0x121] sm:$0xff] %vm1680_vm3, %v1851_v46  ;;  %v5412_v42 = vld [vmem:[#allocation3 + $0x11] sm:$0xff]  ;;  %v5414_v15 = vld [vmem:[#allocation3 + $0x21] sm:$0xff] }
 0x2e3   :  { %v5416_v45 = vld [vmem:[#allocation3 + $0x31] sm:$0xff]  ;;  %v1951_v51 = vpack.c.bf16 %v5412_v42, %v1935_v9  ;;  %v5423_v25 = vld [vmem:[#allocation3 + $0x41] sm:$0xff]  ;;  %v3689_v31 = vld [vmem:[%s5923_s2 + $0xc] sm:$0xf] }
 0x2e4   :  { %v5421_v20 = vpack.c.bf16 %v5416_v45, %v5414_v15  ;;  %v5427_v32 = vld [vmem:[#allocation3 + $0x61] sm:$0xff]  ;;  %v5468_v62 = vld [vmem:[#allocation3 + $0x71] sm:$0xff]  ;;  %v2427_v59 = vsel %vm1985_vm5, %v3689_v31, 0 }
 0x2e5   :  { %v5425_v14 = vld [vmem:[#allocation3 + $0x51] sm:$0xff]  ;;  %4070 = vmatprep.mubr.msk.bf16.mxu1 %vm1680_vm3, %v1951_v51  ;;  %v5472_v49 = vld [vmem:[#allocation3 + $0x22] sm:$0xff]  ;;  %v5476_v36 = vpack.c.bf16 %v5468_v62, %v5427_v32 }
 0x2e6   :  { %v5433_v63 = vld [vmem:[#allocation3 + $0xb1] sm:$0xff]  ;;  %v5435_v39 = vld [vmem:[#allocation3 + $0xc1] sm:$0xff]  ;;  %v5447_v5 = vpack.c.bf16 %v5425_v14, %v5423_v25  ;;  %4071 = vmatmul.mubr.msk.bf16.vlgmr.msra.gmra.mrb[0].mxu1 %vm1680_vm3, %v5421_v20 }
 0x2e7   :  { %v5449_v30 = vld [vmem:[#allocation3 + $0xd1] sm:$0xff]  ;;  %v5451_v10 = vld [vmem:[#allocation3 + $0xe1] sm:$0xff]  ;;  %4087 = vmatpush3.bf16.msra.mxu1 %v2111_v35  ;;  %v1955_v54 = vpack.c.bf16 %v5433_v63, %v1943_v16 }
 0x2e8   :  { %v5453_v26 = vld [vmem:[#allocation3 + $0xf1] sm:$0xff]  ;;  %v5459_v40 = vld [vmem:[#allocation3 + $0x101] sm:$0xff]  ;;  %4074 = vmatprep.mubr.msk.bf16.mxu1 %vm1680_vm3, %v5447_v5  ;;  %4497 = vmatprep.subr.msk.bf16.mxu1 %vm1985_vm5, %v3680_v1  ;;  %v5516_v29 = vpack.c.bf16 %v5449_v30, %v5435_v39 }
 0x2e9   :  { %v5470_v41 = vld [vmem:[#allocation3 + $0x12] sm:$0xff]  ;;  %v5480_v52 = vld [vmem:[#allocation3 + $0x42] sm:$0xff]  ;;  %v5520_v21 = vpack.c.bf16 %v5453_v26, %v5451_v10 }
 0x2ea   :  { %v5478_v33 = vld [vmem:[#allocation3 + $0x32] sm:$0xff]  ;;  %v5487_v13 = vld [vmem:[#allocation3 + $0x62] sm:$0xff] }
 0x2eb   :  { %v5482_v24 = vld [vmem:[#allocation3 + $0x52] sm:$0xff]  ;;  %v5495_v38 = vld [vmem:[#allocation3 + $0xc2] sm:$0xff]  ;;  %v5572_v19 = vpack.c.bf16 %v5478_v33, %v5472_v49 }
 0x2ec   :  { %v5489_v57 = vld [vmem:[#allocation3 + $0xb2] sm:$0xff]  ;;  %v5499_v44 = vld [vmem:[#allocation3 + $0xe2] sm:$0xff]  ;;  %v5577_v58 = vpack.c.bf16 %v5482_v24, %v5480_v52 }
 0x2ed   :  { %v5497_v50 = vld [vmem:[#allocation3 + $0xd2] sm:$0xff]  ;;  %v5506_v11 = vld [vmem:[#allocation3 + $0x102] sm:$0xff] }
 0x2ee   :  { %4075 = vmatmul.mubr.msk.bf16.gmra.mrb[4].mxu1 %vm1680_vm3, %v5476_v36  ;;  %v5504_v18 = vld [vmem:[#allocation3 + $0xf2] sm:$0xff]  ;;  %v1912_v0 = vld [vmem:[#allocation3 + $0x20] sm:$0xff] }
 0x2ef   :  { %4078 = vmatprep.mubr.msk.bf16.mxu1 %vm1680_vm3, %v1955_v54  ;;  %v5526_v48 = vld [vmem:[#allocation3 + $0x111] sm:$0xff]  ;;  %v1914_v4 = vld [vmem:[#allocation3 + $0x40] sm:$0xff]  ;;  %v5600_v22 = vpack.c.bf16 %v5504_v18, %v5499_v44 }
 0x2f0   :  { %v5528_v53 = vld [vmem:[#allocation3 + $0x10] sm:$0xff]  ;;  %v5532_v60 = vpack.c.bf16 %v5526_v48, %v5459_v40  ;;  %v1916_v46 = vld [vmem:[#allocation3 + $0x60] sm:$0xff] }
 0x2f1   :  { %v1926_v61 = vpack.c.bf16 %v5528_v53, %v1910_v34  ;;  %v1913_v2 = vld [vmem:[#allocation3 + $0x30] sm:$0xff]  ;;  %v1918_v51 = vld [vmem:[#allocation3 + $0xa0] sm:$0xff] }
 0x2f2   :  { %v1915_v3 = vld [vmem:[#allocation3 + $0x50] sm:$0xff]  ;;  %v5538_v7 = vpack.c.bf16 %v1913_v2, %v1912_v0  ;;  %v1920_v54 = vld [vmem:[#allocation3 + $0xc0] sm:$0xff]  ;;  %v2393_v37 = vpack.c.bf16 %v1914_v4, %v1913_v2 }
 0x2f3   :  { %v5541_v56 = vpack.c.bf16 %v1915_v3, %v1914_v4  ;;  %v1917_v9 = vld [vmem:[#allocation3 + $0x70] sm:$0xff]  ;;  %v2391_v4 = vld [vmem:[#allocation3 + $0x120] sm:$0xff] }
 0x2f4   :  { %v1919_v35 = vld [vmem:[#allocation3 + $0xb0] sm:$0xff]  ;;  %v5551_v1 = vpack.c.bf16 %v1917_v9, %v1916_v46 }
 0x2f5   :  { %v1930_v16 = vpack.c.bf16 %v1919_v35, %v1918_v51  ;;  %v1921_v34 = vld [vmem:[#allocation3 + $0xd0] sm:$0xff]  ;;  %v1924_v51 = vld [vmem:[#allocation3 + $0x100] sm:$0xff] }
 0x2f6   :  { %4079 = vmatmul.mubr.msk.bf16.gmra.mrb[8].mxu1 %vm1680_vm3, %v5516_v29  ;;  %v5556_v23 = vpack.c.bf16 %v1921_v34, %v1920_v54  ;;  %v1925_v27 = vld [vmem:[#allocation3 + $0x110] sm:$0xff] }
 0x2f7   :  { %4082 = vmatprep.mubr.msk.bf16.mxu1 %vm1680_vm3, %v5520_v21  ;;  %v5564_v6 = vpack.c.bf16 %v1925_v27, %v1924_v51 }
 0x2fe   :  { %4083 = vmatmul.mubr.msk.bf16.gmra.mrb[12].mxu1 %vm1680_vm3, %v5532_v60 }
 0x2ff   :  { %4088 = vmatprep.mubr.msk.bf16.mxu1 %vm1680_vm3, %v1926_v61  ;;  %v1922_v61 = vld [vmem:[#allocation3 + $0xe0] sm:$0xff] }
 0x306   :  { %4089 = vmatmul.mubr.msk.bf16.vlgmr.msra.gmra.mrb[0].mxu1 %vm1680_vm3, %v5538_v7 }
 0x307   :  { %4105 = vmatpush3.bf16.msra.mxu1 %v2261_v17  ;;  %4092 = vmatprep.mubr.msk.bf16.mxu1 %vm1680_vm3, %v5541_v56  ;;  %v1923_v17 = vld [vmem:[#allocation3 + $0xf0] sm:$0xff] }
 0x308   :  { %4498 = vmatprep.subr.msk.bf16.mxu1 %vm1985_vm5, %v3689_v31  ;;  %v5558_v47 = vpack.c.bf16 %v1923_v17, %v1922_v61  ;;  %v2398_v2 = vpack.c.bf16 %v1924_v51, %v1923_v17 }
 0x30e   :  { %4093 = vmatmul.mubr.msk.bf16.gmra.mrb[4].mxu1 %vm1680_vm3, %v5551_v1 }
 0x30f   :  { %4096 = vmatprep.mubr.msk.bf16.mxu1 %vm1680_vm3, %v1930_v16  ;;  %v2226_v16 = vpack.c.bf16 %v5470_v41, %v2210_v55  ;;  %v2217_v55 = vld [vmem:[#allocation3 + $0x72] sm:$0xff] }
 0x310   :  { %v5588_v31 = vpack.c.bf16 %v2217_v55, %v5487_v13 }
 0x312   :  { %5959 = vst [vmem:[#allocation5_spill] sm:$0xff] %v5588_v31 }
 0x316   :  { %4097 = vmatmul.mubr.msk.bf16.gmra.mrb[8].mxu1 %vm1680_vm3, %v5556_v23 }
 0x317   :  { %4100 = vmatprep.mubr.msk.bf16.mxu1 %vm1680_vm3, %v5558_v47 }
 0x31e   :  { %4101 = vmatmul.mubr.msk.bf16.gmra.mrb[12].mxu1 %vm1680_vm3, %v5564_v6 }
 0x31f   :  { %4106 = vmatprep.mubr.msk.bf16.mxu1 %vm1680_vm3, %v2226_v16  ;;  %v2218_v16 = vld [vmem:[#allocation3 + $0xa2] sm:$0xff] }
 0x320   :  { %v2230_v28 = vpack.c.bf16 %v5489_v57, %v2218_v16  ;;  %v2225_v16 = vld [vmem:[#allocation3 + $0x112] sm:$0xff] }
 0x321   :  { %v5607_v12 = vpack.c.bf16 %v2225_v16, %v5506_v11 }
 0x323   :  { %5961 = vst [vmem:[#allocation7_spill] sm:$0xff] %v5607_v12 }
 0x326   :  { %4107 = vmatmul.mubr.msk.bf16.vlgmr.msra.gmra.mrb[0].mxu1 %vm1680_vm3, %v5572_v19 }
 0x327   :  { %4123 = vmatpush3.bf16.msra.mxu1 %v2427_v59  ;;  %4110 = vmatprep.mubr.msk.bf16.mxu1 %vm1680_vm3, %v5577_v58  ;;  %v5596_v59 = vpack.c.bf16 %v5497_v50, %v5495_v38 }
 0x328   :  { %4499 = vmatprep.subr.msk.bf16.mxu1 %vm1985_vm5, %v3698_v43  ;;  %v2397_v43 = vpack.c.bf16 %v1922_v61, %v1921_v34 }
 0x329   :  { %5960 = vst [vmem:[#allocation6_spill] sm:$0xff] %v5596_v59 }
 0x32e   :  { %4111 = vmatmul.mubr.msk.bf16.gmra.mrb[4].mxu1 %vm1680_vm3, %v5588_v31  ;;  %v2394_v31 = vpack.c.bf16 %v1916_v46, %v1915_v3  ;;  %v5963_v46 = vpack.c.bf16 %v5423_v25, %v5416_v45  ;;  %v5966_v45 = vpack.c.bf16 %v5451_v10, %v5449_v30  ;;  %v5967_v25 = vpack.c.bf16 %v5459_v40, %v5453_v26  ;;  %v3725_v30 = vld [vmem:[%s5923_s2 + $0x1c] sm:$0xf]  ;;  %v2715_v40 = vld [vmem:[#allocation3 + $0x82] sm:$0xff] }
 0x32f   :  { %4114 = vmatprep.mubr.msk.bf16.mxu1 %vm1680_vm3, %v2230_v28  ;;  %v2392_v28 = vpack.c.bf16 %v1912_v0, %v5528_v53  ;;  %v2383_v53 = vld [vmem:[#allocation3 + $0x80] sm:$0xff]  ;;  %v5969_v10 = vpack.c.bf16 %v5480_v52, %v5478_v33  ;;  %v5970_v26 = vpack.c.bf16 %v5487_v13, %v5482_v24  ;;  %v5973_v33 = vpack.c.bf16 %v5506_v11, %v5504_v18 }
 0x330   :  { %v2395_v0 = vpack.c.bf16 %v2383_v53, %v1917_v9  ;;  %v5965_v9 = vpack.c.bf16 %v5435_v39, %v5433_v63  ;;  %v5968_v63 = vpack.c.bf16 %v5472_v49, %v5470_v41  ;;  %v5971_v41 = vpack.c.bf16 %v5495_v38, %v5489_v57  ;;  %v2723_v52 = vld [vmem:[#allocation3 + $0x122] sm:$0xff]  ;;  %v2882_v38 = vld [vmem:[#allocation3 + $0x90] sm:$0xff] }
 0x331   :  { %v5972_v49 = vpack.c.bf16 %v5499_v44, %v5497_v50  ;;  %v2731_v24 = vpack.c.bf16 %v2723_v52, %v2225_v16  ;;  %v3092_v13 = vsel %vm1985_vm5, %v3725_v30, 0  ;;  %v3734_v57 = vld [vmem:[%s5923_s2 + $0x20] sm:$0xf]  ;;  %v2894_v50 = vpack.c.bf16 %v2882_v38, %v2383_v53  ;;  %v2890_v44 = vld [vmem:[#allocation3 + $0x130] sm:$0xff] }
 0x332   :  { %v2898_v18 = vpack.c.bf16 %v2890_v44, %v2391_v4  ;;  %v3258_v11 = vsel %vm1985_vm5, %v3734_v57, 0 }
 0x336   :  { %4115 = vmatmul.mubr.msk.bf16.gmra.mrb[8].mxu1 %vm1680_vm3, %v5596_v59  ;;  %v3707_v59 = vld [vmem:[%s5923_s2 + $0x14] sm:$0xf] }
 0x337   :  { %4118 = vmatprep.mubr.msk.bf16.mxu1 %vm1680_vm3, %v5600_v22  ;;  %v2759_v3 = vsel %vm1985_vm5, %v3707_v59, 0 }
 0x33e   :  { %4119 = vmatmul.mubr.msk.bf16.gmra.mrb[12].mxu1 %vm1680_vm3, %v5607_v12  ;;  %v2396_v12 = vpack.c.bf16 %v1920_v54, %v1919_v35 }
 0x33f   :  { %4124 = vmatprep.mubr.msk.bf16.mxu1 %vm1680_vm3, %v2392_v28 }
 0x346   :  { %4125 = vmatmul.mubr.msk.bf16.vlgmr.msra.gmra.mrb[0].mxu1 %vm1680_vm3, %v2393_v37  ;;  %v2399_v37 = vpack.c.bf16 %v2391_v4, %v1925_v27  ;;  %v5964_v27 = vpack.c.bf16 %v5427_v32, %v5425_v14  ;;  %v2557_v14 = vld [vmem:[#allocation3 + $0x121] sm:$0xff] }
 0x347   :  { %4141 = vmatpush3.bf16.msra.mxu1 %v2593_v8  ;;  %4128 = vmatprep.mubr.msk.bf16.mxu1 %vm1680_vm3, %v2394_v31  ;;  %v5962_v8 = vpack.c.bf16 %v5414_v15, %v5412_v42  ;;  %v2549_v42 = vld [vmem:[#allocation3 + $0x81] sm:$0xff]  ;;  %v2565_v32 = vpack.c.bf16 %v2557_v14, %v5526_v48  ;;  %v5976_v48 = vld [vmem:[#allocation7_spill] sm:$0xff] }
 0x348   :  { %4500 = vmatprep.subr.msk.bf16.mxu1 %vm1985_vm5, %v3707_v59  ;;  %v2561_v15 = vpack.c.bf16 %v2549_v42, %v5468_v62  ;;  %v2727_v62 = vpack.c.bf16 %v2715_v40, %v2217_v55 }
 0x34e   :  { %4129 = vmatmul.mubr.msk.bf16.gmra.mrb[4].mxu1 %vm1680_vm3, %v2395_v0 }
 0x34f   :  { %4132 = vmatprep.mubr.msk.bf16.mxu1 %vm1680_vm3, %v2396_v12  ;;  %v3716_v12 = vld [vmem:[%s5923_s2 + $0x18] sm:$0xf] }
 0x350   :  { %v2926_v39 = vsel %vm1985_vm5, %v3716_v12, 0 }
 0x356   :  { %4133 = vmatmul.mubr.msk.bf16.gmra.mrb[8].mxu1 %vm1680_vm3, %v2397_v43 }
 0x357   :  { %4136 = vmatprep.mubr.msk.bf16.mxu1 %vm1680_vm3, %v2398_v2 }
 0x35e   :  { %4137 = vmatmul.mubr.msk.bf16.gmra.mrb[12].mxu1 %vm1680_vm3, %v2399_v37 }
 0x35f   :  { %4142 = vmatprep.mubr.msk.bf16.mxu1 %vm1680_vm3, %v5962_v8 }
 0x366   :  { %4143 = vmatmul.mubr.msk.bf16.vlgmr.msra.gmra.mrb[0].mxu1 %vm1680_vm3, %v5963_v46 }
 0x367   :  { %4159 = vmatpush3.bf16.msra.mxu1 %v2759_v3  ;;  %4146 = vmatprep.mubr.msk.bf16.mxu1 %vm1680_vm3, %v5964_v27 }
 0x368   :  { %4501 = vmatprep.subr.msk.bf16.mxu1 %vm1985_vm5, %v3716_v12 }
 0x36e   :  { %4147 = vmatmul.mubr.msk.bf16.gmra.mrb[4].mxu1 %vm1680_vm3, %v2561_v15 }
 0x36f   :  { %4150 = vmatprep.mubr.msk.bf16.mxu1 %vm1680_vm3, %v5965_v9 }
 0x376   :  { %4151 = vmatmul.mubr.msk.bf16.gmra.mrb[8].mxu1 %vm1680_vm3, %v5966_v45 }
 0x377   :  { %4154 = vmatprep.mubr.msk.bf16.mxu1 %vm1680_vm3, %v5967_v25 }
 0x37e   :  { %4155 = vmatmul.mubr.msk.bf16.gmra.mrb[12].mxu1 %vm1680_vm3, %v2565_v32 }
 0x37f   :  { %4160 = vmatprep.mubr.msk.bf16.mxu1 %vm1680_vm3, %v5968_v63 }
 0x386   :  { %4161 = vmatmul.mubr.msk.bf16.vlgmr.msra.gmra.mrb[0].mxu1 %vm1680_vm3, %v5969_v10 }
 0x387   :  { %4177 = vmatpush3.bf16.msra.mxu1 %v2926_v39  ;;  %4164 = vmatprep.mubr.msk.bf16.mxu1 %vm1680_vm3, %v5970_v26 }
 0x388   :  { %4502 = vmatprep.subr.msk.bf16.mxu1 %vm1985_vm5, %v3725_v30 }
 0x38e   :  { %4165 = vmatmul.mubr.msk.bf16.gmra.mrb[4].mxu1 %vm1680_vm3, %v2727_v62 }
 0x38f   :  { %4168 = vmatprep.mubr.msk.bf16.mxu1 %vm1680_vm3, %v5971_v41 }
 0x396   :  { %4169 = vmatmul.mubr.msk.bf16.gmra.mrb[8].mxu1 %vm1680_vm3, %v5972_v49 }
 0x397   :  { %4172 = vmatprep.mubr.msk.bf16.mxu1 %vm1680_vm3, %v5973_v33 }
 0x39e   :  { %4173 = vmatmul.mubr.msk.bf16.gmra.mrb[12].mxu1 %vm1680_vm3, %v2731_v24 }
 0x39f   :  { %4178 = vmatprep.mubr.msk.bf16.mxu1 %vm1680_vm3, %v5538_v7 }
 0x3a6   :  { %4179 = vmatmul.mubr.msk.bf16.vlgmr.msra.gmra.mrb[0].mxu1 %vm1680_vm3, %v5541_v56 }
 0x3a7   :  { %4195 = vmatpush3.bf16.msra.mxu1 %v3092_v13  ;;  %4182 = vmatprep.mubr.msk.bf16.mxu1 %vm1680_vm3, %v5551_v1 }
 0x3a8   :  { %4503 = vmatprep.subr.msk.bf16.mxu1 %vm1985_vm5, %v3734_v57 }
 0x3ae   :  { %4183 = vmatmul.mubr.msk.bf16.gmra.mrb[4].mxu1 %vm1680_vm3, %v2894_v50 }
 0x3af   :  { %4186 = vmatprep.mubr.msk.bf16.mxu1 %vm1680_vm3, %v5556_v23  ;;  %v3048_v23 = vld [vmem:[#allocation3 + $0x91] sm:$0xff] }
 0x3b6   :  { %4187 = vmatmul.mubr.msk.bf16.gmra.mrb[8].mxu1 %vm1680_vm3, %v5558_v47  ;;  %v3060_v47 = vpack.c.bf16 %v3048_v23, %v2549_v42 }
 0x3b7   :  { %4190 = vmatprep.mubr.msk.bf16.mxu1 %vm1680_vm3, %v5564_v6 }
 0x3be   :  { %4191 = vmatmul.mubr.msk.bf16.gmra.mrb[12].mxu1 %vm1680_vm3, %v2898_v18 }
 0x3bf   :  { %4196 = vmatprep.mubr.msk.bf16.mxu1 %vm1680_vm3, %v5421_v20  ;;  %v3056_v20 = vld [vmem:[#allocation3 + $0x131] sm:$0xff] }
 0x3c0   :  { %v3064_v6 = vpack.c.bf16 %v3056_v20, %v2557_v14 }
 0x3c6   :  { %4197 = vmatmul.mubr.msk.bf16.vlgmr.msra.gmra.mrb[0].mxu1 %vm1680_vm3, %v5447_v5  ;;  %v5974_v5 = vld [vmem:[#allocation5_spill] sm:$0xff] }
 0x3c7   :  { %4213 = vmatpush3.bf16.msra.mxu1 %v3258_v11  ;;  %4200 = vmatprep.mubr.msk.bf16.mxu1 %vm1680_vm3, %v5476_v36  ;;  %v3214_v36 = vld [vmem:[#allocation3 + $0x92] sm:$0xff] }
 0x3ce   :  { %4201 = vmatmul.mubr.msk.bf16.gmra.mrb[4].mxu1 %vm1680_vm3, %v3060_v47 }
 0x3cf   :  { %4204 = vmatprep.mubr.msk.bf16.mxu1 %vm1680_vm3, %v5516_v29  ;;  %v3226_v29 = vpack.c.bf16 %v3214_v36, %v2715_v40 }
 0x3d6   :  { %4205 = vmatmul.mubr.msk.bf16.gmra.mrb[8].mxu1 %vm1680_vm3, %v5520_v21  ;;  %v5975_v21 = vld [vmem:[#allocation6_spill] sm:$0xff] }
 0x3d7   :  { %4208 = vmatprep.mubr.msk.bf16.mxu1 %vm1680_vm3, %v5532_v60 }
 0x3de   :  { %4209 = vmatmul.mubr.msk.bf16.gmra.mrb[12].mxu1 %vm1680_vm3, %v3064_v6 }
 0x3df   :  { %4214 = vmatprep.mubr.msk.bf16.mxu1 %vm1680_vm3, %v5572_v19  ;;  %v3222_v19 = vld [vmem:[#allocation3 + $0x132] sm:$0xff] }
 0x3e0   :  { %v3230_v60 = vpack.c.bf16 %v3222_v19, %v2723_v52 }
 0x3e6   :  { %4215 = vmatmul.mubr.msk.bf16.vlgmr.msra.gmra.mrb[0].mxu1 %vm1680_vm3, %v5577_v58 }
 0x3e7   :  { %4218 = vmatprep.mubr.msk.bf16.mxu1 %vm1680_vm3, %v5974_v5 }
 0x3ee   :  { %4219 = vmatmul.mubr.msk.bf16.gmra.mrb[4].mxu1 %vm1680_vm3, %v3226_v29 }
 0x3ef   :  { %4222 = vmatprep.mubr.msk.bf16.mxu1 %vm1680_vm3, %v5975_v21 }
 0x3f6   :  { %4223 = vmatmul.mubr.msk.bf16.gmra.mrb[8].mxu1 %vm1680_vm3, %v5600_v22 }
 0x3f7   :  { %4226 = vmatprep.mubr.msk.bf16.mxu1 %vm1680_vm3, %v5976_v48 }
 0x3fe   :  { %4227 = vmatmul.mubr.msk.bf16.gmra.mrb[12].mxu1 %vm1680_vm3, %v3230_v60 }
 0x4b9   :  { %v4216_v58 = vpop.f32.mrb[0].mxu1 }
 0x4ba   :  { %v3294_v7 = vpop.f32.mrb[1].mxu1  ;;  %v3378_v61 = vsel %vm1680_vm3, %v4216_v58, 0.0 }
 0x4bb   :  { %v4217_v56 = vpop.f32.mrb[2].mxu1  ;;  %v3375_v1 = vsel %vm1680_vm3, %v3294_v7, 0.0 }
 0x4bc   :  { %v3297_v35 = vpop.f32.mrb[3].mxu1  ;;  %v3380_v22 = vsel %vm1680_vm3, %v4217_v56, 0.0 }
 0x4bd   :  { %v3376_v54 = vsel %vm1680_vm3, %v3297_v35, 0.0 }
 0x4be   :  { %v3377_v34 = vadd.f32 %v3376_v54, %v3375_v1 }
 0x4c0   :  { %v3379_v17 = vadd.f32 %v3378_v61, %v3377_v34 }
 0x4c1   :  { %v4220_v51 = vpop.f32.mrb[4].mxu1 }
 0x4c2   :  { %v3310_v55 = vpop.f32.mrb[5].mxu1  ;;  %v3381_v31 = vadd.f32 %v3380_v22, %v3379_v17  ;;  %v3386_v2 = vsel %vm1680_vm3, %v4220_v51, 0.0 }
 0x4c3   :  { %v3382_v59 = vsel %vm1680_vm3, %v3310_v55, 0.0  ;;  %v4221_v16 = vpop.f32.mrb[6].mxu1 }
 0x4c4   :  { %v3383_v28 = vadd.f32 %v3382_v59, %v3381_v31  ;;  %v3313_v53 = vpop.f32.mrb[7].mxu1  ;;  %v3388_v37 = vsel %vm1680_vm3, %v4221_v16, 0.0 }
 0x4c5   :  { %v3384_v0 = vsel %vm1680_vm3, %v3313_v53, 0.0 }
 0x4c6   :  { %v3385_v43 = vadd.f32 %v3384_v0, %v3383_v28 }
 0x4c8   :  { %v3387_v4 = vadd.f32 %v3386_v2, %v3385_v43 }
 0x4c9   :  { %v4224_v8 = vpop.f32.mrb[8].mxu1 }
 0x4ca   :  { %v3326_v3 = vpop.f32.mrb[9].mxu1  ;;  %v3389_v12 = vadd.f32 %v3388_v37, %v3387_v4  ;;  %v3394_v25 = vsel %vm1680_vm3, %v4224_v8, 0.0 }
 0x4cb   :  { %v3390_v46 = vsel %vm1680_vm3, %v3326_v3, 0.0  ;;  %v4225_v27 = vpop.f32.mrb[10].mxu1 }
 0x4cc   :  { %v3391_v42 = vadd.f32 %v3390_v46, %v3389_v12  ;;  %v3329_v15 = vpop.f32.mrb[11].mxu1  ;;  %v3396_v32 = vsel %vm1680_vm3, %v4225_v27, 0.0 }
 0x4cd   :  { %v3392_v9 = vsel %vm1680_vm3, %v3329_v15, 0.0 }
 0x4ce   :  { %v3393_v45 = vadd.f32 %v3392_v9, %v3391_v42 }
 0x4d0   :  { %v3395_v14 = vadd.f32 %v3394_v25, %v3393_v45 }
 0x4d1   :  { %v4228_v63 = vpop.f32.mrb[12].mxu1 }
 0x4d2   :  { %v3342_v39 = vpop.f32.mrb[13].mxu1  ;;  %v3397_v30 = vadd.f32 %v3396_v32, %v3395_v14  ;;  %v3402_v33 = vsel %vm1680_vm3, %v4228_v63, 0.0 }
 0x4d3   :  { %v3398_v10 = vsel %vm1680_vm3, %v3342_v39, 0.0  ;;  %v4229_v26 = vpop.f32.mrb[14].mxu1 }
 0x4d4   :  { %v3399_v40 = vadd.f32 %v3398_v10, %v3397_v30  ;;  %v3345_v62 = vpop.f32.mrb[15].mxu1  ;;  %v3404_v24 = vsel %vm1680_vm3, %v4229_v26, 0.0 }
 0x4d5   :  { %v3400_v41 = vsel %vm1680_vm3, %v3345_v62, 0.0 }
 0x4d6   :  { %v3401_v49 = vadd.f32 %v3400_v41, %v3399_v40 }
 0x4d8   :  { %v3403_v52 = vadd.f32 %v3402_v33, %v3401_v49 }
 0x4da   :  { %v3405_v13 = vadd.f32 %v3404_v24, %v3403_v52 }
 0x4dc   :  { %v3406_v57 = vrot.slane %v3405_v13, 4 }
 0x4de   :  { %v3407_v38 = vadd.f32 %v3406_v57, %v3405_v13 }
 0x4e0   :  { %v3408_v50 = vrot.slane %v3407_v38, 2 }
 0x4e2   :  { %v3409_v44 = vadd.f32 %v3408_v50, %v3407_v38 }
 0x4e4   :  { %v3410_v18 = vrot.slane %v3409_v44, 1 }
 0x4e6   :  { %v3411_v11 = vadd.f32 %v3410_v18, %v3409_v44 }
 0x4e8   :  { %v3412_v23 = vmul.f32 0.0078125, %v3411_v11 }
 0x4ea   :  { %v5753_v47 = vsub.f32 %v3294_v7, %v3412_v23  ;;  %v5755_v20 = vsub.f32 %v3297_v35, %v3412_v23  ;;  %v5757_v6 = vsub.f32 %v4216_v58, %v3412_v23  ;;  %v5759_v5 = vsub.f32 %v4217_v56, %v3412_v23 }
 0x4eb   :  { %v5761_v36 = vsub.f32 %v3310_v55, %v3412_v23  ;;  %v5763_v29 = vsub.f32 %v3313_v53, %v3412_v23  ;;  %v5765_v21 = vsub.f32 %v4220_v51, %v3412_v23  ;;  %v5767_v48 = vsub.f32 %v4221_v16, %v3412_v23 }
 0x4ec   :  { %v5769_v19 = vsub.f32 %v3326_v3, %v3412_v23  ;;  %v5771_v60 = vsub.f32 %v3329_v15, %v3412_v23  ;;  %v5773_v7 = vsub.f32 %v4224_v8, %v3412_v23  ;;  %v5775_v35 = vsub.f32 %v4225_v27, %v3412_v23 }
 0x4ed   :  { %v5777_v58 = vsub.f32 %v3342_v39, %v3412_v23  ;;  %v5779_v56 = vsub.f32 %v3345_v62, %v3412_v23  ;;  %v5781_v1 = vsub.f32 %v4228_v63, %v3412_v23  ;;  %v5783_v54 = vsub.f32 %v4229_v26, %v3412_v23 }
 0x4ee   :  { %v3429_v34 = vmul.f32 %v5753_v47, %v5753_v47  ;;  %v3430_v61 = vmul.f32 %v5755_v20, %v5755_v20  ;;  %v3431_v17 = vmul.f32 %v5757_v6, %v5757_v6  ;;  %v3432_v22 = vmul.f32 %v5759_v5, %v5759_v5 }
 0x4ef   :  { %v3433_v59 = vmul.f32 %v5761_v36, %v5761_v36  ;;  %v3434_v53 = vmul.f32 %v5763_v29, %v5763_v29  ;;  %v3435_v2 = vmul.f32 %v5765_v21, %v5765_v21  ;;  %v3436_v8 = vmul.f32 %v5767_v48, %v5767_v48 }
 0x4f0   :  { %v3445_v51 = vsel %vm1680_vm3, %v3429_v34, 0.0  ;;  %v3446_v55 = vsel %vm1680_vm3, %v3430_v61, 0.0  ;;  %v3448_v16 = vsel %vm1680_vm3, %v3431_v17, 0.0  ;;  %v3450_v0 = vsel %vm1680_vm3, %v3432_v22, 0.0 }
 0x4f1   :  { %v3447_v31 = vadd.f32 %v3446_v55, %v3445_v51  ;;  %v3452_v4 = vsel %vm1680_vm3, %v3433_v59, 0.0  ;;  %v3454_v3 = vsel %vm1680_vm3, %v3434_v53, 0.0  ;;  %v3437_v46 = vmul.f32 %v5769_v19, %v5769_v19  ;;  %v3373_v59 = vld [vmem:[%s5926_s5] sm:$0x1] }
 0x4f2   :  { %v3456_v27 = vsel %vm1680_vm3, %v3435_v2, 0.0  ;;  %v3438_v15 = vmul.f32 %v5771_v60, %v5771_v60  ;;  %v3458_v9 = vsel %vm1680_vm3, %v3436_v8, 0.0  ;;  %v3439_v25 = vmul.f32 %v5773_v7, %v5773_v7  ;;  %v5977_v53 = vld [vmem:[#allocation4_spill] sm:$0xff] }
 0x4f3   :  { %v3449_v28 = vadd.f32 %v3448_v16, %v3447_v31  ;;  %v3460_v14 = vsel %vm1680_vm3, %v3437_v46, 0.0  ;;  %v3440_v63 = vmul.f32 %v5775_v35, %v5775_v35  ;;  %v3441_v10 = vmul.f32 %v5777_v58, %v5777_v58 }
 0x4f4   :  { %v3462_v39 = vsel %vm1680_vm3, %v3438_v15, 0.0  ;;  %v3464_v26 = vsel %vm1680_vm3, %v3439_v25, 0.0  ;;  %v3442_v62 = vmul.f32 %v5779_v56, %v5779_v56  ;;  %v3443_v33 = vmul.f32 %v5781_v1, %v5781_v1 }
 0x4f5   :  { %v3451_v43 = vadd.f32 %v3450_v0, %v3449_v28  ;;  %v3466_v41 = vsel %vm1680_vm3, %v3440_v63, 0.0  ;;  %v3468_v52 = vsel %vm1680_vm3, %v3441_v10, 0.0  ;;  %v3444_v13 = vmul.f32 %v5783_v54, %v5783_v54 }
 0x4f6   :  { %v3470_v57 = vsel %vm1680_vm3, %v3442_v62, 0.0  ;;  %v3472_v50 = vsel %vm1680_vm3, %v3443_v33, 0.0  ;;  %v5978_v0 = vsub.s32 0, %v5977_v53 }
 0x4f7   :  { %v3453_v37 = vadd.f32 %v3452_v4, %v3451_v43  ;;  %v3474_v18 = vsel %vm1680_vm3, %v3444_v13, 0.0 }
 0x4f9   :  { %v3455_v12 = vadd.f32 %v3454_v3, %v3453_v37  ;;  %v3743_v3 = vld [vmem:[%s5927_s6] ss:$0 sm:$0xff] }
 0x4fb   :  { %v3457_v42 = vadd.f32 %v3456_v27, %v3455_v12 }
 0x4fd   :  { %v3459_v45 = vadd.f32 %v3458_v9, %v3457_v42 }
 0x4ff   :  { %v3461_v32 = vadd.f32 %v3460_v14, %v3459_v45 }
 0x501   :  { %v3463_v30 = vadd.f32 %v3462_v39, %v3461_v32 }
 0x503   :  { %v3465_v40 = vadd.f32 %v3464_v26, %v3463_v30 }
 0x505   :  { %v3467_v49 = vadd.f32 %v3466_v41, %v3465_v40 }
 0x507   :  { %v3469_v24 = vadd.f32 %v3468_v52, %v3467_v49 }
 0x509   :  { %v3471_v38 = vadd.f32 %v3470_v57, %v3469_v24 }
 0x50b   :  { %v3473_v44 = vadd.f32 %v3472_v50, %v3471_v38 }
 0x50d   :  { %v3475_v11 = vadd.f32 %v3474_v18, %v3473_v44 }
 0x50f   :  { %v3476_v23 = vrot.slane %v3475_v11, 4 }
 0x511   :  { %v3477_v34 = vadd.f32 %v3476_v23, %v3475_v11 }
 0x513   :  { %v3478_v61 = vrot.slane %v3477_v34, 2 }
 0x515   :  { %v3479_v17 = vadd.f32 %v3478_v61, %v3477_v34 }
 0x517   :  { %v3480_v22 = vrot.slane %v3479_v17, 1 }
 0x519   :  { %v3481_v51 = vadd.f32 %v3480_v22, %v3479_v17 }
 0x51b   :  { %v3482_v55 = vmul.f32 0.0078125, %v3481_v51 }
 0x51d   :  { %v3483_v31 = vadd.f32 1e-05, %v3482_v55 }
 0x51f   :  { %4508 = vrsqrt.f32 %v3483_v31 }
 0x529   :  { %v4509_v16 = vpop.eup %4508 }
 0x52a   :  { %v3485_v28 = vmul.f32 %v4509_v16, %v3373_v59 }
 0x52c   :  { %v3490_v43 = vrot.slane %v3485_v28, %v5978_v0 }
 0x52e   :  { %v3492_v2 = vmul.f32 %v3490_v43, %v5753_v47  ;;  %v3493_v4 = vmul.f32 %v3490_v43, %v5755_v20  ;;  %v3494_v37 = vmul.f32 %v3490_v43, %v5757_v6  ;;  %v3495_v8 = vmul.f32 %v3490_v43, %v5759_v5 }
 0x52f   :  { %v3496_v12 = vmul.f32 %v3490_v43, %v5761_v36  ;;  %v3497_v46 = vmul.f32 %v3490_v43, %v5763_v29  ;;  %v3498_v27 = vmul.f32 %v3490_v43, %v5765_v21  ;;  %v3499_v42 = vmul.f32 %v3490_v43, %v5767_v48 }
 0x530   :  { %v3500_v47 = vmul.f32 %v3490_v43, %v5769_v19  ;;  %v3501_v20 = vmul.f32 %v3490_v43, %v5771_v60  ;;  %v3502_v6 = vmul.f32 %v3490_v43, %v5773_v7  ;;  %v3503_v5 = vmul.f32 %v3490_v43, %v5775_v35 }
 0x531   :  { %v3504_v15 = vmul.f32 %v3490_v43, %v5777_v58  ;;  %v3505_v9 = vmul.f32 %v3490_v43, %v5779_v56  ;;  %v3506_v36 = vmul.f32 %v3490_v43, %v5781_v1  ;;  %v3507_v29 = vmul.f32 %v3490_v43, %v5783_v54 }
 0x532   :  { %v3514_v45 = vadd.f32 %v3743_v3, %v3492_v2  ;;  %v3515_v21 = vadd.f32 %v3743_v3, %v3493_v4  ;;  %v3516_v25 = vadd.f32 %v3743_v3, %v3494_v37  ;;  %v3517_v48 = vadd.f32 %v3743_v3, %v3495_v8 }
 0x533   :  { %v3518_v14 = vadd.f32 %v3743_v3, %v3496_v12  ;;  %v3519_v19 = vadd.f32 %v3743_v3, %v3497_v46  ;;  %v3520_v32 = vadd.f32 %v3743_v3, %v3498_v27  ;;  %v3521_v60 = vadd.f32 %v3743_v3, %v3499_v42 }
 0x534   :  { %v3522_v63 = vadd.f32 %v3743_v3, %v3500_v47  ;;  %v3523_v7 = vadd.f32 %v3743_v3, %v3501_v20  ;;  %v3524_v39 = vadd.f32 %v3743_v3, %v3502_v6  ;;  %v3525_v35 = vadd.f32 %v3743_v3, %v3503_v5 }
 0x535   :  { %v3526_v30 = vadd.f32 %v3743_v3, %v3504_v15  ;;  %v3527_v58 = vadd.f32 %v3743_v3, %v3505_v9  ;;  %v3528_v10 = vadd.f32 %v3743_v3, %v3506_v36  ;;  %v3529_v56 = vadd.f32 %v3743_v3, %v3507_v29 }
 0x536   :  { %v3530_v26 = vmax.f32 %v3514_v45, 0.0  ;;  %v3531_v1 = vmax.f32 %v3515_v21, 0.0  ;;  %v3532_v40 = vmax.f32 %v3516_v25, 0.0  ;;  %v3533_v54 = vmax.f32 %v3517_v48, 0.0 }
 0x537   :  { %v3534_v62 = vmax.f32 %v3518_v14, 0.0  ;;  %v3535_v41 = vmax.f32 %v3519_v19, 0.0  ;;  %v3536_v49 = vmax.f32 %v3520_v32, 0.0  ;;  %v3537_v33 = vmax.f32 %v3521_v60, 0.0 }
 0x538   :  { %v3538_v52 = vmax.f32 %v3522_v63, 0.0  ;;  %v3539_v24 = vmax.f32 %v3523_v7, 0.0  ;;  %v3540_v13 = vmax.f32 %v3524_v39, 0.0  ;;  %v3541_v57 = vmax.f32 %v3525_v35, 0.0  ;;  %3546 = vst.msk [vmem:[%s5928_s7] sm:$0xff] %vm1680_vm3, %v3530_v26  ;;  %3547 = vst.msk [vmem:[%s5928_s7 + $0x8] sm:$0xff] %vm1680_vm3, %v3531_v1 }
 0x539   :  { %3548 = vst.msk [vmem:[%s5928_s7 + $0x10] sm:$0xff] %vm1680_vm3, %v3532_v40  ;;  %3549 = vst.msk [vmem:[%s5928_s7 + $0x18] sm:$0xff] %vm1680_vm3, %v3533_v54  ;;  %v3542_v38 = vmax.f32 %v3526_v30, 0.0  ;;  %v3543_v50 = vmax.f32 %v3527_v58, 0.0  ;;  %v3544_v44 = vmax.f32 %v3528_v10, 0.0  ;;  %v3545_v18 = vmax.f32 %v3529_v56, 0.0 }
 0x53a   :  { %3550 = vst.msk [vmem:[%s5928_s7 + $0x20] sm:$0xff] %vm1680_vm3, %v3534_v62  ;;  %3551 = vst.msk [vmem:[%s5928_s7 + $0x28] sm:$0xff] %vm1680_vm3, %v3535_v41 }
 0x53b   :  { %3552 = vst.msk [vmem:[%s5928_s7 + $0x30] sm:$0xff] %vm1680_vm3, %v3536_v49  ;;  %3553 = vst.msk [vmem:[%s5928_s7 + $0x38] sm:$0xff] %vm1680_vm3, %v3537_v33 }
 0x53c   :  { %3554 = vst.msk [vmem:[%s5928_s7 + $0x40] sm:$0xff] %vm1680_vm3, %v3538_v52  ;;  %3555 = vst.msk [vmem:[%s5928_s7 + $0x48] sm:$0xff] %vm1680_vm3, %v3539_v24 }
 0x53d   :  { %3556 = vst.msk [vmem:[%s5928_s7 + $0x50] sm:$0xff] %vm1680_vm3, %v3540_v13  ;;  %3557 = vst.msk [vmem:[%s5928_s7 + $0x58] sm:$0xff] %vm1680_vm3, %v3541_v57 }
 0x53e   :  { %3558 = vst.msk [vmem:[%s5928_s7 + $0x60] sm:$0xff] %vm1680_vm3, %v3542_v38  ;;  %3559 = vst.msk [vmem:[%s5928_s7 + $0x68] sm:$0xff] %vm1680_vm3, %v3543_v50 }
 0x53f   :  { %3560 = vst.msk [vmem:[%s5928_s7 + $0x70] sm:$0xff] %vm1680_vm3, %v3544_v44  ;;  %3561 = vst.msk [vmem:[%s5928_s7 + $0x78] sm:$0xff] %vm1680_vm3, %v3545_v18 }

</bundles_post_ra>
